<compile_context>
chip_gen: v7x
topology: tpu7x:2x2x1
jax: 0.10.0
libtpu: 0.0.40
codegen_flags: <defaults>
</compile_context>

<pallas_src>
import math
import jax
import jax.numpy as jnp
from jax.experimental import pallas as pl
from jax.experimental.pallas import tpu as pltpu

LEAKY_SLOPE = 0.2
INV_SQRT2 = 1.0 / math.sqrt(2.0)
HALO = 8  # halo rows stored per tile (4 real: 2 front + 2 back, 4 zero pad)


def _round_up(x, m):
    return ((x + m - 1) // m) * m


def _footprint_bytes(TL, Cpi, Cpo, cb, ob):
    """Approximate per-step VMEM residents (weights single-buffered)."""
    weights = (3 * Cpi * Cpi + 3 * Cpi * Cpo + Cpi * Cpo) * cb + (Cpi + Cpo) * 4
    streams = 2 * TL * Cpi * cb + 2 * HALO * Cpi * cb + 2 * TL * Cpo * ob
    scratch = 2 * (TL + HALO) * Cpi * cb
    live_f32 = 4 * (TL + HALO) * max(Cpi, Cpo) * 4
    return weights + streams + scratch + live_f32


def _choose_tile_l(L, Cpi, Cpo, cb, ob, budget):
    lr = max(16, _round_up(L, 16))
    tl = 16
    for cand in (32, 64, 128, 256, 512, 1024):
        if cand > lr:
            break
        if _footprint_bytes(cand, Cpi, Cpo, cb, ob) <= budget:
            tl = cand
    return tl


def _make_kernel(TL, L_real, compute_dtype):
    """Per-(batch, L-tile) kernel.

    Ref shapes (batch/tile dims squeezed):
      x_ref    : (TL, Cpi)   compute_dtype  raw rows [t*TL, t*TL+TL)
      halo_ref : (HALO, Cpi) compute_dtype  rows 0:2 = raw [t*TL-2, t*TL),
                                            rows 2:4 = raw [(t+1)*TL, (t+1)*TL+2)
      w1_ref   : (3, Cpi, Cpi)  compute_dtype (tap-major)
      b1_ref   : (1, Cpi)    f32
      w2_ref   : (3, Cpi, Cpo)  compute_dtype
      b2_ref   : (1, Cpo)    f32
      wsc_ref  : (Cpi, Cpo)  compute_dtype  (1x1 shortcut, no bias)
      out_ref  : (TL, Cpo)   out_dtype
      xact_ref : (TL+HALO, Cpi) compute_dtype scratch (activated conv1 input)
      h1a_ref  : (TL+HALO, Cpi) compute_dtype scratch (activated conv1 output)
    """

    def kernel(x_ref, halo_ref, w1_ref, b1_ref, w2_ref, b2_ref, wsc_ref,
               out_ref, xact_ref, h1a_ref):
        t = pl.program_id(1)

        # TODO(synk): dropout is identity (eval mode); normalize=False and
        # downsample='none' so norm / pool layers are skipped.

        # ---- activate + cast the conv1 input window ONCE into scratch -------
        # xact row m corresponds to raw input row t*TL - 2 + m.
        def act(v):
            v = v.astype(jnp.float32)
            return jnp.where(v >= 0, v, LEAKY_SLOPE * v).astype(compute_dtype)

        xact_ref[pl.ds(0, 2), :] = act(halo_ref[pl.ds(0, 2), :])        # rows -2,-1
        xact_ref[pl.ds(2, TL), :] = act(x_ref[...])                     # rows 0..TL-1
        xact_ref[pl.ds(TL + 2, 2), :] = act(halo_ref[pl.ds(2, 2), :])   # rows TL,TL+1

        # ---- conv1: Cin->Cin, k=3, pad=1 (taps = ref slices of scratch) -----
        h1 = jnp.dot(xact_ref[pl.ds(0, TL + 2), :], w1_ref[0],
                     preferred_element_type=jnp.float32)
        h1 = h1 + jnp.dot(xact_ref[pl.ds(1, TL + 2), :], w1_ref[1],
                          preferred_element_type=jnp.float32)
        h1 = h1 + jnp.dot(xact_ref[pl.ds(2, TL + 2), :], w1_ref[2],
                          preferred_element_type=jnp.float32)
        h1 = h1 + b1_ref[...]
        h1a = jnp.where(h1 >= 0, h1, LEAKY_SLOPE * h1)

        # conv2's zero padding along L: zero every hidden row whose global
        # position is outside [0, L_real) (also kills the L->Lp tail rows).
        gpos = t * TL - 1 + jax.lax.broadcasted_iota(jnp.int32, (TL + 2, 1), 0)
        valid = (gpos >= 0) & (gpos < L_real)
        h1a_ref[pl.ds(0, TL + 2), :] = jnp.where(valid, h1a, 0.0).astype(compute_dtype)

        # ---- conv2: Cin->Cout, k=3, pad=1 ------------------------------------
        # TODO(synk): for C_in <= 128 on v6e/v7x, folding the 3 taps into the
        # contraction dim (K = 3*Cpi) would fill the 256-wide MXU better.
        h2 = jnp.dot(h1a_ref[pl.ds(0, TL), :], w2_ref[0],
                     preferred_element_type=jnp.float32)
        h2 = h2 + jnp.dot(h1a_ref[pl.ds(1, TL), :], w2_ref[1],
                          preferred_element_type=jnp.float32)
        h2 = h2 + jnp.dot(h1a_ref[pl.ds(2, TL), :], w2_ref[2],
                          preferred_element_type=jnp.float32)
        h2 = h2 + b2_ref[...]

        # ---- shortcut: 1x1 conv (no bias) on the RAW (non-activated) rows ----
        sc = jnp.dot(x_ref[...], wsc_ref[...], preferred_element_type=jnp.float32)

        out_ref[...] = ((sc + h2) * INV_SQRT2).astype(out_ref.dtype)

    return kernel


def resblk1d_forward(x_ncl, params, *, compute_dtype=jnp.bfloat16, tile_l=None,
                     out_dtype=jnp.float32, return_nlc=False):
    """x_ncl: (N, Cin, L) float32, like the PyTorch module's input.

    Set return_nlc=True (and out_dtype=bf16) if the consumer can stay in NLC
    to drop the final relayout and halve the output HBM writes.
    """
    w1, b1, w2, b2, wsc = params  # (3,Cin,Cin),(Cin,),(3,Cin,Cout),(Cout,),(Cin,Cout)
    B, C_in, L = x_ncl.shape
    C_out = w2.shape[2]

    # Lane-dense channel padding.
    Cpi = _round_up(C_in, 128)
    Cpo = _round_up(C_out, 128)

    cb = jnp.dtype(compute_dtype).itemsize
    ob = jnp.dtype(out_dtype).itemsize

    # ---- length tiling (TL multiple of 16) ----------------------------------
    if tile_l is None:
        TL = _choose_tile_l(L, Cpi, Cpo, cb, ob, budget=24 * 2**20)
    else:
        TL = max(16, _round_up(int(tile_l), 16))
    TL = min(TL, max(16, _round_up(L, 16)))
    # v7x has 2 TensorCores: keep >= 2 parallel grid steps when B == 1.
    if B == 1 and TL >= L and L > 16:
        TL = max(16, _round_up(pl.cdiv(L, 2), 16))
    nT = pl.cdiv(L, TL)
    Lp = nT * TL

    dt = compute_dtype
    x_nlc = jnp.transpose(x_ncl, (0, 2, 1)).astype(dt)
    # Main stream: non-overlapping (B, Lp, Cpi) tiles, zero-padded
    # (matches Conv1d zero padding / leaky(0)=0).
    x_main = jnp.pad(x_nlc, ((0, 0), (0, Lp - L), (0, Cpi - C_in)))

    # Halo stream: only the 4 boundary rows each tile needs (plus 4 zero rows
    # for clean sublane tiling) -> ~HALO/TL of the input, not a full copy.
    zrow2 = jnp.zeros((B, 2, Cpi), dt)
    zrow4 = jnp.zeros((B, 4, Cpi), dt)
    fronts = [zrow2] + [x_main[:, t * TL - 2: t * TL, :] for t in range(1, nT)]
    backs = ([x_main[:, (t + 1) * TL: (t + 1) * TL + 2, :] for t in range(nT - 1)]
             + [zrow2])
    halo = jnp.stack(
        [jnp.concatenate([f, b, zrow4], axis=1) for f, b in zip(fronts, backs)],
        axis=1)                                              # (B, nT, HALO, Cpi)

    w1p = jnp.pad(w1.astype(dt), ((0, 0), (0, Cpi - C_in), (0, Cpi - C_in)))
    w2p = jnp.pad(w2.astype(dt), ((0, 0), (0, Cpi - C_in), (0, Cpo - C_out)))
    wscp = jnp.pad(wsc.astype(dt), ((0, Cpi - C_in), (0, Cpo - C_out)))
    b1p = jnp.pad(b1.astype(jnp.float32), (0, Cpi - C_in)).reshape(1, Cpi)
    b2p = jnp.pad(b2.astype(jnp.float32), (0, Cpo - C_out)).reshape(1, Cpo)

    fp = _footprint_bytes(TL, Cpi, Cpo, cb, ob)
    vmem_limit = int(min(max(int(1.4 * fp), 16 * 2**20), 48 * 2**20))

    kernel = _make_kernel(TL, L, compute_dtype)

    def build(single_buffer_weights):
        wkw = ({"pipeline_mode": pl.Buffered(1)} if single_buffer_weights else {})
        grid_spec = pltpu.PrefetchScalarGridSpec(
            num_scalar_prefetch=0,
            grid=(B, nT),
            in_specs=[
                pl.BlockSpec((None, TL, Cpi), lambda b, t: (b, t, 0)),
                pl.BlockSpec((None, None, HALO, Cpi), lambda b, t: (b, t, 0, 0)),
                pl.BlockSpec((3, Cpi, Cpi), lambda b, t: (0, 0, 0), **wkw),
                pl.BlockSpec((1, Cpi), lambda b, t: (0, 0), **wkw),
                pl.BlockSpec((3, Cpi, Cpo), lambda b, t: (0, 0, 0), **wkw),
                pl.BlockSpec((1, Cpo), lambda b, t: (0, 0), **wkw),
                pl.BlockSpec((Cpi, Cpo), lambda b, t: (0, 0), **wkw),
            ],
            out_specs=pl.BlockSpec((None, TL, Cpo), lambda b, t: (b, t, 0)),
            scratch_shapes=[pltpu.VMEM((TL + HALO, Cpi), compute_dtype),
                            pltpu.VMEM((TL + HALO, Cpi), compute_dtype)],
        )
        return pl.pallas_call(
            kernel,
            out_shape=jax.ShapeDtypeStruct((B, Lp, Cpo), out_dtype),
            grid_spec=grid_spec,
            compiler_params=pltpu.CompilerParams(
                dimension_semantics=("parallel", "parallel"),
                vmem_limit_bytes=vmem_limit,
            ),
        )

    args = (x_main, halo, w1p, b1p, w2p, b2p, wscp)
    try:
        out_nlc = build(True)(*args)
    except Exception:
        # Narrow fallback: same kernel, default (double) buffering for weights.
        out_nlc = build(False)(*args)

    out_nlc = out_nlc[:, :L, :C_out]
    if return_nlc:
        return out_nlc
    return jnp.transpose(out_nlc, (0, 2, 1))   # back to PyTorch (N, Cout, L)


# ------------------------- init + pure-JAX reference -------------------------

def _weight_norm(v):
    """weight_norm with g initialized to ||v|| (PyTorch default at init):
    effective weight == v; computed explicitly for fidelity.  v: (Cout,Cin,K)."""
    norm = jnp.sqrt(jnp.sum(v * v, axis=(1, 2), keepdims=True))
    g = norm
    return g * v / norm


def make_params(key, dim_in, dim_out):
    k1, k2, k3, k4, k5 = jax.random.split(key, 5)
    # PyTorch Conv1d weight layout: (Cout, Cin, K)
    w1_pt = _weight_norm(0.1 * jax.random.normal(k1, (dim_in, dim_in, 3), jnp.float32))
    b1 = 0.1 * jax.random.normal(k2, (dim_in,), jnp.float32)
    w2_pt = _weight_norm(0.1 * jax.random.normal(k3, (dim_out, dim_in, 3), jnp.float32))
    b2 = 0.1 * jax.random.normal(k4, (dim_out,), jnp.float32)
    wsc_pt = _weight_norm(0.1 * jax.random.normal(k5, (dim_out, dim_in, 1), jnp.float32))
    # repack to tap-major matmul layout (K, Cin, Cout)
    w1 = jnp.transpose(w1_pt, (2, 1, 0))
    w2 = jnp.transpose(w2_pt, (2, 1, 0))
    wsc = jnp.transpose(wsc_pt[:, :, 0], (1, 0))             # (Cin, Cout)
    return w1, b1, w2, b2, wsc


def reference_forward(x_ncl, params):
    """Pure-JAX f32 reference mirroring the PyTorch module (eval mode)."""
    w1, b1, w2, b2, wsc = params

    def leaky(x):
        return jnp.where(x >= 0, x, LEAKY_SLOPE * x)

    def conv1d(x, w_kio, b, pad):
        w_oik = jnp.transpose(w_kio, (2, 1, 0))               # (Cout, Cin, K)
        y = jax.lax.conv_general_dilated(
            x, w_oik, window_strides=(1,), padding=((pad, pad),),
            dimension_numbers=("NCH", "OIH", "NCH"))
        if b is not None:
            y = y + b[None, :, None]
        return y

    a = leaky(x_ncl)
    h = conv1d(a, w1, b1, pad=1)
    h = leaky(h)
    h = conv1d(h, w2, b2, pad=1)
    sc = jax.lax.conv_general_dilated(
        x_ncl, jnp.transpose(wsc, (1, 0))[:, :, None],
        window_strides=(1,), padding=((0, 0),),
        dimension_numbers=("NCH", "OIH", "NCH"))
    return (sc + h) * INV_SQRT2


if __name__ == "__main__":
    key = jax.random.PRNGKey(0)
    kx, kp = jax.random.split(key)

    B, DIM_IN, DIM_OUT, L = 2, 4, 8, 16
    x = jax.random.normal(kx, (B, DIM_IN, L), jnp.float32)    # PyTorch NCL input
    params = make_params(kp, DIM_IN, DIM_OUT)
    ref = jax.block_until_ready(reference_forward(x, params))

    # 1) single L tile, f32 streams + MXU operands -> tight tolerance
    out = jax.block_until_ready(
        resblk1d_forward(x, params, compute_dtype=jnp.float32))
    assert out.shape == (B, DIM_OUT, L), out.shape
    assert jnp.allclose(out, ref, atol=1e-5, rtol=1e-5), (
        float(jnp.max(jnp.abs(out - ref))))

    # 2) multi-tile path (TL=16 -> 3 tiles, exercises the halo), bf16 streams
    L2 = 40
    x2 = jax.random.normal(jax.random.fold_in(kx, 2), (B, DIM_IN, L2), jnp.float32)
    ref2 = jax.block_until_ready(reference_forward(x2, params))
    out2 = jax.block_until_ready(
        resblk1d_forward(x2, params, compute_dtype=jnp.bfloat16, tile_l=16))
    assert out2.shape == (B, DIM_OUT, L2), out2.shape
    assert jnp.allclose(out2, ref2, atol=5e-2, rtol=5e-2), (
        float(jnp.max(jnp.abs(out2 - ref2))))

    # 3) L not divisible by the tile (tail mask + halo), f32, tight tolerance
    L3 = 20
    x3 = jax.random.normal(jax.random.fold_in(kx, 3), (B, DIM_IN, L3), jnp.float32)
    ref3 = jax.block_until_ready(reference_forward(x3, params))
    out3 = jax.block_until_ready(
        resblk1d_forward(x3, params, compute_dtype=jnp.float32, tile_l=16))
    assert out3.shape == (B, DIM_OUT, L3), out3.shape
    assert jnp.allclose(out3, ref3, atol=1e-5, rtol=1e-5), (
        float(jnp.max(jnp.abs(out3 - ref3))))

    # 4) B=1: auto-tiling still produces >= 2 parallel steps (v7x 2-TC path)
    L4 = 64
    x4 = jax.random.normal(jax.random.fold_in(kx, 4), (1, DIM_IN, L4), jnp.float32)
    ref4 = jax.block_until_ready(reference_forward(x4, params))
    out4 = jax.block_until_ready(
        resblk1d_forward(x4, params, compute_dtype=jnp.float32))
    assert out4.shape == (1, DIM_OUT, L4), out4.shape
    assert jnp.allclose(out4, ref4, atol=1e-5, rtol=1e-5), (
        float(jnp.max(jnp.abs(out4 - ref4))))

    print("KERNEL_OK")
</pallas_src>

<mosaic_0001>
module attributes {stable_mosaic.version = 11 : i64} {
  func.func @kernel(%arg0: i32, %arg1: i32, %arg2: memref<1x16x128xf32, #tpu.memory_space<vmem>>, %arg3: memref<1x1x8x128xf32, #tpu.memory_space<vmem>>, %arg4: memref<3x128x128xf32, #tpu.memory_space<vmem>>, %arg5: memref<1x128xf32, #tpu.memory_space<vmem>>, %arg6: memref<3x128x128xf32, #tpu.memory_space<vmem>>, %arg7: memref<1x128xf32, #tpu.memory_space<vmem>>, %arg8: memref<128x128xf32, #tpu.memory_space<vmem>>, %arg9: memref<1x16x128xf32, #tpu.memory_space<vmem>>, %arg10: memref<24x128xf32, #tpu.memory_space<vmem>>, %arg11: memref<24x128xf32, #tpu.memory_space<vmem>>) attributes {dimension_semantics = [#tpu.dimension_semantics<parallel>, #tpu.dimension_semantics<parallel>], iteration_bounds = array<i64: 2, 1>, scalar_prefetch = 0 : i64, scratch_operands = 2 : i64, tpu.core_type = #tpu.core_type<tc>, window_params = [{transform_indices = @transform_0, window_bounds = array<i64: 1, 16, 128>}, {transform_indices = @transform_1, window_bounds = array<i64: 1, 1, 8, 128>}, {pipeline_mode = #tpu.pipeline_mode<synchronous>, transform_indices = @transform_2, window_bounds = array<i64: 3, 128, 128>}, {pipeline_mode = #tpu.pipeline_mode<synchronous>, transform_indices = @transform_3, window_bounds = array<i64: 1, 128>}, {pipeline_mode = #tpu.pipeline_mode<synchronous>, transform_indices = @transform_4, window_bounds = array<i64: 3, 128, 128>}, {pipeline_mode = #tpu.pipeline_mode<synchronous>, transform_indices = @transform_5, window_bounds = array<i64: 1, 128>}, {pipeline_mode = #tpu.pipeline_mode<synchronous>, transform_indices = @transform_6, window_bounds = array<i64: 128, 128>}, {transform_indices = @transform_7, window_bounds = array<i64: 1, 16, 128>}]} {
    %c0 = arith.constant 0 : index
    %c0_0 = arith.constant 0 : index
    %c0_1 = arith.constant 0 : index
    %c0_2 = arith.constant 0 : index
    %0 = vector.load %arg3[%c0, %c0_0, %c0_1, %c0_2] : memref<1x1x8x128xf32, #tpu.memory_space<vmem>>, vector<1x1x2x128xf32>
    %1 = vector.shape_cast %0 : vector<1x1x2x128xf32> to vector<2x128xf32>
    %cst = arith.constant 0.000000e+00 : f32
    %2 = vector.broadcast %cst : f32 to vector<2x128xf32>
    %3 = arith.cmpf oge, %1, %2 : vector<2x128xf32>
    %cst_3 = arith.constant 2.000000e-01 : f32
    %4 = vector.broadcast %cst_3 : f32 to vector<2x128xf32>
    %5 = arith.mulf %4, %1 : vector<2x128xf32>
    %6 = arith.select %3, %1, %5 : vector<2x128xi1>, vector<2x128xf32>
    %c0_4 = arith.constant 0 : index
    %c0_5 = arith.constant 0 : index
    %7 = vector.load %arg10[%c0_4, %c0_5] : memref<24x128xf32, #tpu.memory_space<vmem>>, vector<2x128xf32>
    tpu.vector_store %arg10[%c0_4, %c0_5], %6 {strides = array<i32>} : memref<24x128xf32, #tpu.memory_space<vmem>>, vector<2x128xf32>,
    %c0_6 = arith.constant 0 : index
    %c0_7 = arith.constant 0 : index
    %c0_8 = arith.constant 0 : index
    %8 = vector.load %arg2[%c0_6, %c0_7, %c0_8] : memref<1x16x128xf32, #tpu.memory_space<vmem>>, vector<1x16x128xf32>
    %9 = vector.shape_cast %8 : vector<1x16x128xf32> to vector<16x128xf32>
    %cst_9 = arith.constant 0.000000e+00 : f32
    %10 = vector.broadcast %cst_9 : f32 to vector<16x128xf32>
    %11 = arith.cmpf oge, %9, %10 : vector<16x128xf32>
    %cst_10 = arith.constant 2.000000e-01 : f32
    %12 = vector.broadcast %cst_10 : f32 to vector<16x128xf32>
    %13 = arith.mulf %12, %9 : vector<16x128xf32>
    %14 = arith.select %11, %9, %13 : vector<16x128xi1>, vector<16x128xf32>
    %c2 = arith.constant 2 : index
    %c0_11 = arith.constant 0 : index
    %15 = vector.load %arg10[%c2, %c0_11] : memref<24x128xf32, #tpu.memory_space<vmem>>, vector<16x128xf32>
    tpu.vector_store %arg10[%c2, %c0_11], %14 {strides = array<i32>} : memref<24x128xf32, #tpu.memory_space<vmem>>, vector<16x128xf32>,
    %c0_12 = arith.constant 0 : index
    %c0_13 = arith.constant 0 : index
    %c2_14 = arith.constant 2 : index
    %c0_15 = arith.constant 0 : index
    %16 = vector.load %arg3[%c0_12, %c0_13, %c2_14, %c0_15] : memref<1x1x8x128xf32, #tpu.memory_space<vmem>>, vector<1x1x2x128xf32>
    %17 = vector.shape_cast %16 : vector<1x1x2x128xf32> to vector<2x128xf32>
    %cst_16 = arith.constant 0.000000e+00 : f32
    %18 = vector.broadcast %cst_16 : f32 to vector<2x128xf32>
    %19 = arith.cmpf oge, %17, %18 : vector<2x128xf32>
    %cst_17 = arith.constant 2.000000e-01 : f32
    %20 = vector.broadcast %cst_17 : f32 to vector<2x128xf32>
    %21 = arith.mulf %20, %17 : vector<2x128xf32>
    %22 = arith.select %19, %17, %21 : vector<2x128xi1>, vector<2x128xf32>
    %c18 = arith.constant 18 : index
    %c0_18 = arith.constant 0 : index
    %23 = vector.load %arg10[%c18, %c0_18] : memref<24x128xf32, #tpu.memory_space<vmem>>, vector<2x128xf32>
    tpu.vector_store %arg10[%c18, %c0_18], %22 {strides = array<i32>} : memref<24x128xf32, #tpu.memory_space<vmem>>, vector<2x128xf32>,
    %c0_19 = arith.constant 0 : index
    %c0_20 = arith.constant 0 : index
    %24 = vector.load %arg10[%c0_19, %c0_20] : memref<24x128xf32, #tpu.memory_space<vmem>>, vector<18x128xf32>
    %c0_21 = arith.constant 0 : index
    %c0_22 = arith.constant 0 : index
    %c0_23 = arith.constant 0 : index
    %25 = vector.load %arg4[%c0_21, %c0_22, %c0_23] : memref<3x128x128xf32, #tpu.memory_space<vmem>>, vector<1x128x128xf32>
    %26 = vector.shape_cast %25 : vector<1x128x128xf32> to vector<128x128xf32>
    %cst_24 = arith.constant dense<0.000000e+00> : vector<18x128xf32>
    %27 = tpu.matmul %24, %26, %cst_24 {dimension_numbers = #tpu.dot_dimension_numbers<[1], [0], [0], [1], [0, 0, 1, 1], [], []>} : vector<18x128xf32>, vector<128x128xf32>, vector<18x128xf32> -> vector<18x128xf32>
    %c1 = arith.constant 1 : index
    %c0_25 = arith.constant 0 : index
    %28 = vector.load %arg10[%c1, %c0_25] : memref<24x128xf32, #tpu.memory_space<vmem>>, vector<18x128xf32>
    %c1_26 = arith.constant 1 : index
    %c0_27 = arith.constant 0 : index
    %c0_28 = arith.constant 0 : index
    %29 = vector.load %arg4[%c1_26, %c0_27, %c0_28] : memref<3x128x128xf32, #tpu.memory_space<vmem>>, vector<1x128x128xf32>
    %30 = vector.shape_cast %29 : vector<1x128x128xf32> to vector<128x128xf32>
    %cst_29 = arith.constant dense<0.000000e+00> : vector<18x128xf32>
    %31 = tpu.matmul %28, %30, %cst_29 {dimension_numbers = #tpu.dot_dimension_numbers<[1], [0], [0], [1], [0, 0, 1, 1], [], []>} : vector<18x128xf32>, vector<128x128xf32>, vector<18x128xf32> -> vector<18x128xf32>
    %32 = arith.addf %27, %31 : vector<18x128xf32>
    %c2_30 = arith.constant 2 : index
    %c0_31 = arith.constant 0 : index
    %33 = vector.load %arg10[%c2_30, %c0_31] : memref<24x128xf32, #tpu.memory_space<vmem>>, vector<18x128xf32>
    %c2_32 = arith.constant 2 : index
    %c0_33 = arith.constant 0 : index
    %c0_34 = arith.constant 0 : index
    %34 = vector.load %arg4[%c2_32, %c0_33, %c0_34] : memref<3x128x128xf32, #tpu.memory_space<vmem>>, vector<1x128x128xf32>
    %35 = vector.shape_cast %34 : vector<1x128x128xf32> to vector<128x128xf32>
    %cst_35 = arith.constant dense<0.000000e+00> : vector<18x128xf32>
    %36 = tpu.matmul %33, %35, %cst_35 {dimension_numbers = #tpu.dot_dimension_numbers<[1], [0], [0], [1], [0, 0, 1, 1], [], []>} : vector<18x128xf32>, vector<128x128xf32>, vector<18x128xf32> -> vector<18x128xf32>
    %37 = arith.addf %32, %36 : vector<18x128xf32>
    %c0_36 = arith.constant 0 : index
    %c0_37 = arith.constant 0 : index
    %38 = vector.load %arg5[%c0_36, %c0_37] : memref<1x128xf32, #tpu.memory_space<vmem>>, vector<1x128xf32>
    %39 = vector.broadcast %38 : vector<1x128xf32> to vector<18x128xf32>
    %40 = arith.addf %37, %39 : vector<18x128xf32>
    %cst_38 = arith.constant 0.000000e+00 : f32
    %41 = vector.broadcast %cst_38 : f32 to vector<18x128xf32>
    %42 = arith.cmpf oge, %40, %41 : vector<18x128xf32>
    %cst_39 = arith.constant 2.000000e-01 : f32
    %43 = vector.broadcast %cst_39 : f32 to vector<18x128xf32>
    %44 = arith.mulf %43, %40 : vector<18x128xf32>
    %45 = arith.select %42, %40, %44 : vector<18x128xi1>, vector<18x128xf32>
    %c16_i32 = arith.constant 16 : i32
    %46 = arith.muli %arg1, %c16_i32 : i32
    %c1_i32 = arith.constant 1 : i32
    %47 = arith.subi %46, %c1_i32 : i32
    %48 = tpu.iota {dimensions = array<i32: 0>} : vector<18x1xi32>
    %49 = vector.broadcast %47 : i32 to vector<18x1xi32>
    %50 = arith.addi %49, %48 : vector<18x1xi32>
    %c0_i32 = arith.constant 0 : i32
    %51 = vector.broadcast %c0_i32 : i32 to vector<18x1xi32>
    %52 = arith.cmpi sge, %50, %51 : vector<18x1xi32>
    %c16_i32_40 = arith.constant 16 : i32
    %53 = vector.broadcast %c16_i32_40 : i32 to vector<18x1xi32>
    %54 = arith.cmpi slt, %50, %53 : vector<18x1xi32>
    %55 = arith.andi %52, %54 : vector<18x1xi1>
    %cst_41 = arith.constant 0.000000e+00 : f32
    %56 = vector.shape_cast %55 : vector<18x1xi1> to vector<18x1xi1>
    %57 = vector.broadcast %56 : vector<18x1xi1> to vector<18x128xi1>
    %58 = vector.broadcast %cst_41 : f32 to vector<18x128xf32>
    %59 = arith.select %57, %45, %58 : vector<18x128xi1>, vector<18x128xf32>
    %c0_42 = arith.constant 0 : index
    %c0_43 = arith.constant 0 : index
    %60 = vector.load %arg11[%c0_42, %c0_43] : memref<24x128xf32, #tpu.memory_space<vmem>>, vector<18x128xf32>
    tpu.vector_store %arg11[%c0_42, %c0_43], %59 {strides = array<i32>} : memref<24x128xf32, #tpu.memory_space<vmem>>, vector<18x128xf32>,
    %c0_44 = arith.constant 0 : index
    %c0_45 = arith.constant 0 : index
    %61 = vector.load %arg11[%c0_44, %c0_45] : memref<24x128xf32, #tpu.memory_space<vmem>>, vector<16x128xf32>
    %c0_46 = arith.constant 0 : index
    %c0_47 = arith.constant 0 : index
    %c0_48 = arith.constant 0 : index
    %62 = vector.load %arg6[%c0_46, %c0_47, %c0_48] : memref<3x128x128xf32, #tpu.memory_space<vmem>>, vector<1x128x128xf32>
    %63 = vector.shape_cast %62 : vector<1x128x128xf32> to vector<128x128xf32>
    %cst_49 = arith.constant dense<0.000000e+00> : vector<16x128xf32>
    %64 = tpu.matmul %61, %63, %cst_49 {dimension_numbers = #tpu.dot_dimension_numbers<[1], [0], [0], [1], [0, 0, 1, 1], [], []>} : vector<16x128xf32>, vector<128x128xf32>, vector<16x128xf32> -> vector<16x128xf32>
    %c1_50 = arith.constant 1 : index
    %c0_51 = arith.constant 0 : index
    %65 = vector.load %arg11[%c1_50, %c0_51] : memref<24x128xf32, #tpu.memory_space<vmem>>, vector<16x128xf32>
    %c1_52 = arith.constant 1 : index
    %c0_53 = arith.constant 0 : index
    %c0_54 = arith.constant 0 : index
    %66 = vector.load %arg6[%c1_52, %c0_53, %c0_54] : memref<3x128x128xf32, #tpu.memory_space<vmem>>, vector<1x128x128xf32>
    %67 = vector.shape_cast %66 : vector<1x128x128xf32> to vector<128x128xf32>
    %cst_55 = arith.constant dense<0.000000e+00> : vector<16x128xf32>
    %68 = tpu.matmul %65, %67, %cst_55 {dimension_numbers = #tpu.dot_dimension_numbers<[1], [0], [0], [1], [0, 0, 1, 1], [], []>} : vector<16x128xf32>, vector<128x128xf32>, vector<16x128xf32> -> vector<16x128xf32>
    %69 = arith.addf %64, %68 : vector<16x128xf32>
    %c2_56 = arith.constant 2 : index
    %c0_57 = arith.constant 0 : index
    %70 = vector.load %arg11[%c2_56, %c0_57] : memref<24x128xf32, #tpu.memory_space<vmem>>, vector<16x128xf32>
    %c2_58 = arith.constant 2 : index
    %c0_59 = arith.constant 0 : index
    %c0_60 = arith.constant 0 : index
    %71 = vector.load %arg6[%c2_58, %c0_59, %c0_60] : memref<3x128x128xf32, #tpu.memory_space<vmem>>, vector<1x128x128xf32>
    %72 = vector.shape_cast %71 : vector<1x128x128xf32> to vector<128x128xf32>
    %cst_61 = arith.constant dense<0.000000e+00> : vector<16x128xf32>
    %73 = tpu.matmul %70, %72, %cst_61 {dimension_numbers = #tpu.dot_dimension_numbers<[1], [0], [0], [1], [0, 0, 1, 1], [], []>} : vector<16x128xf32>, vector<128x128xf32>, vector<16x128xf32> -> vector<16x128xf32>
    %74 = arith.addf %69, %73 : vector<16x128xf32>
    %c0_62 = arith.constant 0 : index
    %c0_63 = arith.constant 0 : index
    %75 = vector.load %arg7[%c0_62, %c0_63] : memref<1x128xf32, #tpu.memory_space<vmem>>, vector<1x128xf32>
    %76 = vector.broadcast %75 : vector<1x128xf32> to vector<16x128xf32>
    %77 = arith.addf %74, %76 : vector<16x128xf32>
    %c0_64 = arith.constant 0 : index
    %c0_65 = arith.constant 0 : index
    %c0_66 = arith.constant 0 : index
    %78 = vector.load %arg2[%c0_64, %c0_65, %c0_66] : memref<1x16x128xf32, #tpu.memory_space<vmem>>, vector<1x16x128xf32>
    %79 = vector.shape_cast %78 : vector<1x16x128xf32> to vector<16x128xf32>
    %c0_67 = arith.constant 0 : index
    %c0_68 = arith.constant 0 : index
    %80 = vector.load %arg8[%c0_67, %c0_68] : memref<128x128xf32, #tpu.memory_space<vmem>>, vector<128x128xf32>
    %cst_69 = arith.constant dense<0.000000e+00> : vector<16x128xf32>
    %81 = tpu.matmul %79, %80, %cst_69 {dimension_numbers = #tpu.dot_dimension_numbers<[1], [0], [0], [1], [0, 0, 1, 1], [], []>} : vector<16x128xf32>, vector<128x128xf32>, vector<16x128xf32> -> vector<16x128xf32>
    %82 = arith.addf %81, %77 : vector<16x128xf32>
    %cst_70 = arith.constant 0.707106769 : f32
    %83 = vector.broadcast %cst_70 : f32 to vector<16x128xf32>
    %84 = arith.mulf %82, %83 : vector<16x128xf32>
    %c0_71 = arith.constant 0 : index
    %c0_72 = arith.constant 0 : index
    %c0_73 = arith.constant 0 : index
    %85 = vector.load %arg9[%c0_71, %c0_72, %c0_73] : memref<1x16x128xf32, #tpu.memory_space<vmem>>, vector<1x16x128xf32>
    %86 = vector.shape_cast %85 : vector<1x16x128xf32> to vector<16x128xf32>
    %87 = vector.shape_cast %84 : vector<16x128xf32> to vector<1x16x128xf32>
    tpu.vector_store %arg9[%c0_71, %c0_72, %c0_73], %87 {strides = array<i32>} : memref<1x16x128xf32, #tpu.memory_space<vmem>>, vector<1x16x128xf32>,
    return
  }
  func.func @transform_0(%arg0: i32, %arg1: i32) -> (i32, i32, i32) {
    %c0_i32 = arith.constant 0 : i32
    %c0_i32_0 = arith.constant 0 : i32
    return %arg0, %arg1, %c0_i32 : i32, i32, i32
  }
  func.func @transform_1(%arg0: i32, %arg1: i32) -> (i32, i32, i32, i32) {
    %c0_i32 = arith.constant 0 : i32
    %c0_i32_0 = arith.constant 0 : i32
    %c0_i32_1 = arith.constant 0 : i32
    return %arg0, %arg1, %c0_i32, %c0_i32_0 : i32, i32, i32, i32
  }
  func.func @transform_2(%arg0: i32, %arg1: i32) -> (i32, i32, i32) {
    %c0_i32 = arith.constant 0 : i32
    %c0_i32_0 = arith.constant 0 : i32
    %c0_i32_1 = arith.constant 0 : i32
    %c0_i32_2 = arith.constant 0 : i32
    return %c0_i32, %c0_i32_0, %c0_i32_1 : i32, i32, i32
  }
  func.func @transform_3(%arg0: i32, %arg1: i32) -> (i32, i32) {
    %c0_i32 = arith.constant 0 : i32
    %c0_i32_0 = arith.constant 0 : i32
    %c0_i32_1 = arith.constant 0 : i32
    return %c0_i32, %c0_i32_0 : i32, i32
  }
  func.func @transform_4(%arg0: i32, %arg1: i32) -> (i32, i32, i32) {
    %c0_i32 = arith.constant 0 : i32
    %c0_i32_0 = arith.constant 0 : i32
    %c0_i32_1 = arith.constant 0 : i32
    %c0_i32_2 = arith.constant 0 : i32
    return %c0_i32, %c0_i32_0, %c0_i32_1 : i32, i32, i32
  }
  func.func @transform_5(%arg0: i32, %arg1: i32) -> (i32, i32) {
    %c0_i32 = arith.constant 0 : i32
    %c0_i32_0 = arith.constant 0 : i32
    %c0_i32_1 = arith.constant 0 : i32
    return %c0_i32, %c0_i32_0 : i32, i32
  }
  func.func @transform_6(%arg0: i32, %arg1: i32) -> (i32, i32) {
    %c0_i32 = arith.constant 0 : i32
    %c0_i32_0 = arith.constant 0 : i32
    %c0_i32_1 = arith.constant 0 : i32
    return %c0_i32, %c0_i32_0 : i32, i32
  }
  func.func @transform_7(%arg0: i32, %arg1: i32) -> (i32, i32, i32) {
    %c0_i32 = arith.constant 0 : i32
    %c0_i32_0 = arith.constant 0 : i32
    return %arg0, %arg1, %c0_i32 : i32, i32, i32
  }
}

module attributes {stable_mosaic.version = 11 : i64} {
  func.func @kernel(%arg0: i32, %arg1: i32, %arg2: memref<1x16x128xf32, #tpu.memory_space<vmem>>, %arg3: memref<1x1x8x128xf32, #tpu.memory_space<vmem>>, %arg4: memref<3x128x128xf32, #tpu.memory_space<vmem>>, %arg5: memref<1x128xf32, #tpu.memory_space<vmem>>, %arg6: memref<3x128x128xf32, #tpu.memory_space<vmem>>, %arg7: memref<1x128xf32, #tpu.memory_space<vmem>>, %arg8: memref<128x128xf32, #tpu.memory_space<vmem>>, %arg9: memref<1x16x128xf32, #tpu.memory_space<vmem>>, %arg10: memref<24x128xf32, #tpu.memory_space<vmem>>, %arg11: memref<24x128xf32, #tpu.memory_space<vmem>>) attributes {dimension_semantics = [#tpu.dimension_semantics<parallel>, #tpu.dimension_semantics<parallel>], iteration_bounds = array<i64: 2, 1>, scalar_prefetch = 0 : i64, scratch_operands = 2 : i64, tpu.core_type = #tpu.core_type<tc>, window_params = [{transform_indices = @transform_0, window_bounds = array<i64: 1, 16, 128>}, {transform_indices = @transform_1, window_bounds = array<i64: 1, 1, 8, 128>}, {pipeline_mode = #tpu.pipeline_mode<synchronous>, transform_indices = @transform_2, window_bounds = array<i64: 3, 128, 128>}, {pipeline_mode = #tpu.pipeline_mode<synchronous>, transform_indices = @transform_3, window_bounds = array<i64: 1, 128>}, {pipeline_mode = #tpu.pipeline_mode<synchronous>, transform_indices = @transform_4, window_bounds = array<i64: 3, 128, 128>}, {pipeline_mode = #tpu.pipeline_mode<synchronous>, transform_indices = @transform_5, window_bounds = array<i64: 1, 128>}, {pipeline_mode = #tpu.pipeline_mode<synchronous>, transform_indices = @transform_6, window_bounds = array<i64: 128, 128>}, {transform_indices = @transform_7, window_bounds = array<i64: 1, 16, 128>}]} {
    %c0 = arith.constant 0 : index
    %c0_0 = arith.constant 0 : index
    %c0_1 = arith.constant 0 : index
    %c0_2 = arith.constant 0 : index
    %0 = vector.load %arg3[%c0, %c0_0, %c0_1, %c0_2] : memref<1x1x8x128xf32, #tpu.memory_space<vmem>>, vector<1x1x2x128xf32>
    %1 = vector.shape_cast %0 : vector<1x1x2x128xf32> to vector<2x128xf32>
    %cst = arith.constant 0.000000e+00 : f32
    %2 = vector.broadcast %cst : f32 to vector<2x128xf32>
    %3 = arith.cmpf oge, %1, %2 : vector<2x128xf32>
    %cst_3 = arith.constant 2.000000e-01 : f32
    %4 = vector.broadcast %cst_3 : f32 to vector<2x128xf32>
    %5 = arith.mulf %4, %1 : vector<2x128xf32>
    %6 = arith.select %3, %1, %5 : vector<2x128xi1>, vector<2x128xf32>
    %c0_4 = arith.constant 0 : index
    %c0_5 = arith.constant 0 : index
    %7 = vector.load %arg10[%c0_4, %c0_5] : memref<24x128xf32, #tpu.memory_space<vmem>>, vector<2x128xf32>
    tpu.vector_store %arg10[%c0_4, %c0_5], %6 {strides = array<i32>} : memref<24x128xf32, #tpu.memory_space<vmem>>, vector<2x128xf32>,
    %c0_6 = arith.constant 0 : index
    %c0_7 = arith.constant 0 : index
    %c0_8 = arith.constant 0 : index
    %8 = vector.load %arg2[%c0_6, %c0_7, %c0_8] : memref<1x16x128xf32, #tpu.memory_space<vmem>>, vector<1x16x128xf32>
    %9 = vector.shape_cast %8 : vector<1x16x128xf32> to vector<16x128xf32>
    %cst_9 = arith.constant 0.000000e+00 : f32
    %10 = vector.broadcast %cst_9 : f32 to vector<16x128xf32>
    %11 = arith.cmpf oge, %9, %10 : vector<16x128xf32>
    %cst_10 = arith.constant 2.000000e-01 : f32
    %12 = vector.broadcast %cst_10 : f32 to vector<16x128xf32>
    %13 = arith.mulf %12, %9 : vector<16x128xf32>
    %14 = arith.select %11, %9, %13 : vector<16x128xi1>, vector<16x128xf32>
    %c2 = arith.constant 2 : index
    %c0_11 = arith.constant 0 : index
    %15 = vector.load %arg10[%c2, %c0_11] : memref<24x128xf32, #tpu.memory_space<vmem>>, vector<16x128xf32>
    tpu.vector_store %arg10[%c2, %c0_11], %14 {strides = array<i32>} : memref<24x128xf32, #tpu.memory_space<vmem>>, vector<16x128xf32>,
    %c0_12 = arith.constant 0 : index
    %c0_13 = arith.constant 0 : index
    %c2_14 = arith.constant 2 : index
    %c0_15 = arith.constant 0 : index
    %16 = vector.load %arg3[%c0_12, %c0_13, %c2_14, %c0_15] : memref<1x1x8x128xf32, #tpu.memory_space<vmem>>, vector<1x1x2x128xf32>
    %17 = vector.shape_cast %16 : vector<1x1x2x128xf32> to vector<2x128xf32>
    %cst_16 = arith.constant 0.000000e+00 : f32
    %18 = vector.broadcast %cst_16 : f32 to vector<2x128xf32>
    %19 = arith.cmpf oge, %17, %18 : vector<2x128xf32>
    %cst_17 = arith.constant 2.000000e-01 : f32
    %20 = vector.broadcast %cst_17 : f32 to vector<2x128xf32>
    %21 = arith.mulf %20, %17 : vector<2x128xf32>
    %22 = arith.select %19, %17, %21 : vector<2x128xi1>, vector<2x128xf32>
    %c18 = arith.constant 18 : index
    %c0_18 = arith.constant 0 : index
    %23 = vector.load %arg10[%c18, %c0_18] : memref<24x128xf32, #tpu.memory_space<vmem>>, vector<2x128xf32>
    tpu.vector_store %arg10[%c18, %c0_18], %22 {strides = array<i32>} : memref<24x128xf32, #tpu.memory_space<vmem>>, vector<2x128xf32>,
    %c0_19 = arith.constant 0 : index
    %c0_20 = arith.constant 0 : index
    %24 = vector.load %arg10[%c0_19, %c0_20] : memref<24x128xf32, #tpu.memory_space<vmem>>, vector<18x128xf32>
    %c0_21 = arith.constant 0 : index
    %c0_22 = arith.constant 0 : index
    %c0_23 = arith.constant 0 : index
    %25 = vector.load %arg4[%c0_21, %c0_22, %c0_23] : memref<3x128x128xf32, #tpu.memory_space<vmem>>, vector<1x128x128xf32>
    %26 = vector.shape_cast %25 : vector<1x128x128xf32> to vector<128x128xf32>
    %cst_24 = arith.constant dense<0.000000e+00> : vector<18x128xf32>
    %27 = tpu.matmul %24, %26, %cst_24 {dimension_numbers = #tpu.dot_dimension_numbers<[1], [0], [0], [1], [0, 0, 1, 1], [], []>} : vector<18x128xf32>, vector<128x128xf32>, vector<18x128xf32> -> vector<18x128xf32>
    %c1 = arith.constant 1 : index
    %c0_25 = arith.constant 0 : index
    %28 = vector.load %arg10[%c1, %c0_25] : memref<24x128xf32, #tpu.memory_space<vmem>>, vector<18x128xf32>
    %c1_26 = arith.constant 1 : index
    %c0_27 = arith.constant 0 : index
    %c0_28 = arith.constant 0 : index
    %29 = vector.load %arg4[%c1_26, %c0_27, %c0_28] : memref<3x128x128xf32, #tpu.memory_space<vmem>>, vector<1x128x128xf32>
    %30 = vector.shape_cast %29 : vector<1x128x128xf32> to vector<128x128xf32>
    %cst_29 = arith.constant dense<0.000000e+00> : vector<18x128xf32>
    %31 = tpu.matmul %28, %30, %cst_29 {dimension_numbers = #tpu.dot_dimension_numbers<[1], [0], [0], [1], [0, 0, 1, 1], [], []>} : vector<18x128xf32>, vector<128x128xf32>, vector<18x128xf32> -> vector<18x128xf32>
    %32 = arith.addf %27, %31 : vector<18x128xf32>
    %c2_30 = arith.constant 2 : index
    %c0_31 = arith.constant 0 : index
    %33 = vector.load %arg10[%c2_30, %c0_31] : memref<24x128xf32, #tpu.memory_space<vmem>>, vector<18x128xf32>
    %c2_32 = arith.constant 2 : index
    %c0_33 = arith.constant 0 : index
    %c0_34 = arith.constant 0 : index
    %34 = vector.load %arg4[%c2_32, %c0_33, %c0_34] : memref<3x128x128xf32, #tpu.memory_space<vmem>>, vector<1x128x128xf32>
    %35 = vector.shape_cast %34 : vector<1x128x128xf32> to vector<128x128xf32>
    %cst_35 = arith.constant dense<0.000000e+00> : vector<18x128xf32>
    %36 = tpu.matmul %33, %35, %cst_35 {dimension_numbers = #tpu.dot_dimension_numbers<[1], [0], [0], [1], [0, 0, 1, 1], [], []>} : vector<18x128xf32>, vector<128x128xf32>, vector<18x128xf32> -> vector<18x128xf32>
    %37 = arith.addf %32, %36 : vector<18x128xf32>
    %c0_36 = arith.constant 0 : index
    %c0_37 = arith.constant 0 : index
    %38 = vector.load %arg5[%c0_36, %c0_37] : memref<1x128xf32, #tpu.memory_space<vmem>>, vector<1x128xf32>
    %39 = vector.broadcast %38 : vector<1x128xf32> to vector<18x128xf32>
    %40 = arith.addf %37, %39 : vector<18x128xf32>
    %cst_38 = arith.constant 0.000000e+00 : f32
    %41 = vector.broadcast %cst_38 : f32 to vector<18x128xf32>
    %42 = arith.cmpf oge, %40, %41 : vector<18x128xf32>
    %cst_39 = arith.constant 2.000000e-01 : f32
    %43 = vector.broadcast %cst_39 : f32 to vector<18x128xf32>
    %44 = arith.mulf %43, %40 : vector<18x128xf32>
    %45 = arith.select %42, %40, %44 : vector<18x128xi1>, vector<18x128xf32>
    %c16_i32 = arith.constant 16 : i32
    %46 = arith.muli %arg1, %c16_i32 : i32
    %c1_i32 = arith.constant 1 : i32
    %47 = arith.subi %46, %c1_i32 : i32
    %48 = tpu.iota {dimensions = array<i32: 0>} : vector<18x1xi32>
    %49 = vector.broadcast %47 : i32 to vector<18x1xi32>
    %50 = arith.addi %49, %48 : vector<18x1xi32>
    %c0_i32 = arith.constant 0 : i32
    %51 = vector.broadcast %c0_i32 : i32 to vector<18x1xi32>
    %52 = arith.cmpi sge, %50, %51 : vector<18x1xi32>
    %c16_i32_40 = arith.constant 16 : i32
    %53 = vector.broadcast %c16_i32_40 : i32 to vector<18x1xi32>
    %54 = arith.cmpi slt, %50, %53 : vector<18x1xi32>
    %55 = arith.andi %52, %54 : vector<18x1xi1>
    %cst_41 = arith.constant 0.000000e+00 : f32
    %56 = vector.shape_cast %55 : vector<18x1xi1> to vector<18x1xi1>
    %57 = vector.broadcast %56 : vector<18x1xi1> to vector<18x128xi1>
    %58 = vector.broadcast %cst_41 : f32 to vector<18x128xf32>
    %59 = arith.select %57, %45, %58 : vector<18x128xi1>, vector<18x128xf32>
    %c0_42 = arith.constant 0 : index
    %c0_43 = arith.constant 0 : index
    %60 = vector.load %arg11[%c0_42, %c0_43] : memref<24x128xf32, #tpu.memory_space<vmem>>, vector<18x128xf32>
    tpu.vector_store %arg11[%c0_42, %c0_43], %59 {strides = array<i32>} : memref<24x128xf32, #tpu.memory_space<vmem>>, vector<18x128xf32>,
    %c0_44 = arith.constant 0 : index
    %c0_45 = arith.constant 0 : index
    %61 = vector.load %arg11[%c0_44, %c0_45] : memref<24x128xf32, #tpu.memory_space<vmem>>, vector<16x128xf32>
    %c0_46 = arith.constant 0 : index
    %c0_47 = arith.constant 0 : index
    %c0_48 = arith.constant 0 : index
    %62 = vector.load %arg6[%c0_46, %c0_47, %c0_48] : memref<3x128x128xf32, #tpu.memory_space<vmem>>, vector<1x128x128xf32>
    %63 = vector.shape_cast %62 : vector<1x128x128xf32> to vector<128x128xf32>
    %cst_49 = arith.constant dense<0.000000e+00> : vector<16x128xf32>
    %64 = tpu.matmul %61, %63, %cst_49 {dimension_numbers = #tpu.dot_dimension_numbers<[1], [0], [0], [1], [0, 0, 1, 1], [], []>} : vector<16x128xf32>, vector<128x128xf32>, vector<16x128xf32> -> vector<16x128xf32>
    %c1_50 = arith.constant 1 : index
    %c0_51 = arith.constant 0 : index
    %65 = vector.load %arg11[%c1_50, %c0_51] : memref<24x128xf32, #tpu.memory_space<vmem>>, vector<16x128xf32>
    %c1_52 = arith.constant 1 : index
    %c0_53 = arith.constant 0 : index
    %c0_54 = arith.constant 0 : index
    %66 = vector.load %arg6[%c1_52, %c0_53, %c0_54] : memref<3x128x128xf32, #tpu.memory_space<vmem>>, vector<1x128x128xf32>
    %67 = vector.shape_cast %66 : vector<1x128x128xf32> to vector<128x128xf32>
    %cst_55 = arith.constant dense<0.000000e+00> : vector<16x128xf32>
    %68 = tpu.matmul %65, %67, %cst_55 {dimension_numbers = #tpu.dot_dimension_numbers<[1], [0], [0], [1], [0, 0, 1, 1], [], []>} : vector<16x128xf32>, vector<128x128xf32>, vector<16x128xf32> -> vector<16x128xf32>
    %69 = arith.addf %64, %68 : vector<16x128xf32>
    %c2_56 = arith.constant 2 : index
    %c0_57 = arith.constant 0 : index
    %70 = vector.load %arg11[%c2_56, %c0_57] : memref<24x128xf32, #tpu.memory_space<vmem>>, vector<16x128xf32>
    %c2_58 = arith.constant 2 : index
    %c0_59 = arith.constant 0 : index
    %c0_60 = arith.constant 0 : index
    %71 = vector.load %arg6[%c2_58, %c0_59, %c0_60] : memref<3x128x128xf32, #tpu.memory_space<vmem>>, vector<1x128x128xf32>
    %72 = vector.shape_cast %71 : vector<1x128x128xf32> to vector<128x128xf32>
    %cst_61 = arith.constant dense<0.000000e+00> : vector<16x128xf32>
    %73 = tpu.matmul %70, %72, %cst_61 {dimension_numbers = #tpu.dot_dimension_numbers<[1], [0], [0], [1], [0, 0, 1, 1], [], []>} : vector<16x128xf32>, vector<128x128xf32>, vector<16x128xf32> -> vector<16x128xf32>
    %74 = arith.addf %69, %73 : vector<16x128xf32>
    %c0_62 = arith.constant 0 : index
    %c0_63 = arith.constant 0 : index
    %75 = vector.load %arg7[%c0_62, %c0_63] : memref<1x128xf32, #tpu.memory_space<vmem>>, vector<1x128xf32>
    %76 = vector.broadcast %75 : vector<1x128xf32> to vector<16x128xf32>
    %77 = arith.addf %74, %76 : vector<16x128xf32>
    %c0_64 = arith.constant 0 : index
    %c0_65 = arith.constant 0 : index
    %c0_66 = arith.constant 0 : index
    %78 = vector.load %arg2[%c0_64, %c0_65, %c0_66] : memref<1x16x128xf32, #tpu.memory_space<vmem>>, vector<1x16x128xf32>
    %79 = vector.shape_cast %78 : vector<1x16x128xf32> to vector<16x128xf32>
    %c0_67 = arith.constant 0 : index
    %c0_68 = arith.constant 0 : index
    %80 = vector.load %arg8[%c0_67, %c0_68] : memref<128x128xf32, #tpu.memory_space<vmem>>, vector<128x128xf32>
    %cst_69 = arith.constant dense<0.000000e+00> : vector<16x128xf32>
    %81 = tpu.matmul %79, %80, %cst_69 {dimension_numbers = #tpu.dot_dimension_numbers<[1], [0], [0], [1], [0, 0, 1, 1], [], []>} : vector<16x128xf32>, vector<128x128xf32>, vector<16x128xf32> -> vector<16x128xf32>
    %82 = arith.addf %81, %77 : vector<16x128xf32>
    %cst_70 = arith.constant 0.707106769 : f32
    %83 = vector.broadcast %cst_70 : f32 to vector<16x128xf32>
    %84 = arith.mulf %82, %83 : vector<16x128xf32>
    %c0_71 = arith.constant 0 : index
    %c0_72 = arith.constant 0 : index
    %c0_73 = arith.constant 0 : index
    %85 = vector.load %arg9[%c0_71, %c0_72, %c0_73] : memref<1x16x128xf32, #tpu.memory_space<vmem>>, vector<1x16x128xf32>
    %86 = vector.shape_cast %85 : vector<1x16x128xf32> to vector<16x128xf32>
    %87 = vector.shape_cast %84 : vector<16x128xf32> to vector<1x16x128xf32>
    tpu.vector_store %arg9[%c0_71, %c0_72, %c0_73], %87 {strides = array<i32>} : memref<1x16x128xf32, #tpu.memory_space<vmem>>, vector<1x16x128xf32>,
    return
  }
  func.func @transform_0(%arg0: i32, %arg1: i32) -> (i32, i32, i32) {
    %c0_i32 = arith.constant 0 : i32
    %c0_i32_0 = arith.constant 0 : i32
    return %arg0, %arg1, %c0_i32 : i32, i32, i32
  }
  func.func @transform_1(%arg0: i32, %arg1: i32) -> (i32, i32, i32, i32) {
    %c0_i32 = arith.constant 0 : i32
    %c0_i32_0 = arith.constant 0 : i32
    %c0_i32_1 = arith.constant 0 : i32
    return %arg0, %arg1, %c0_i32, %c0_i32_0 : i32, i32, i32, i32
  }
  func.func @transform_2(%arg0: i32, %arg1: i32) -> (i32, i32, i32) {
    %c0_i32 = arith.constant 0 : i32
    %c0_i32_0 = arith.constant 0 : i32
    %c0_i32_1 = arith.constant 0 : i32
    %c0_i32_2 = arith.constant 0 : i32
    return %c0_i32, %c0_i32_0, %c0_i32_1 : i32, i32, i32
  }
  func.func @transform_3(%arg0: i32, %arg1: i32) -> (i32, i32) {
    %c0_i32 = arith.constant 0 : i32
    %c0_i32_0 = arith.constant 0 : i32
    %c0_i32_1 = arith.constant 0 : i32
    return %c0_i32, %c0_i32_0 : i32, i32
  }
  func.func @transform_4(%arg0: i32, %arg1: i32) -> (i32, i32, i32) {
    %c0_i32 = arith.constant 0 : i32
    %c0_i32_0 = arith.constant 0 : i32
    %c0_i32_1 = arith.constant 0 : i32
    %c0_i32_2 = arith.constant 0 : i32
    return %c0_i32, %c0_i32_0, %c0_i32_1 : i32, i32, i32
  }
  func.func @transform_5(%arg0: i32, %arg1: i32) -> (i32, i32) {
    %c0_i32 = arith.constant 0 : i32
    %c0_i32_0 = arith.constant 0 : i32
    %c0_i32_1 = arith.constant 0 : i32
    return %c0_i32, %c0_i32_0 : i32, i32
  }
  func.func @transform_6(%arg0: i32, %arg1: i32) -> (i32, i32) {
    %c0_i32 = arith.constant 0 : i32
    %c0_i32_0 = arith.constant 0 : i32
    %c0_i32_1 = arith.constant 0 : i32
    return %c0_i32, %c0_i32_0 : i32, i32
  }
  func.func @transform_7(%arg0: i32, %arg1: i32) -> (i32, i32, i32) {
    %c0_i32 = arith.constant 0 : i32
    %c0_i32_0 = arith.constant 0 : i32
    return %arg0, %arg1, %c0_i32 : i32, i32, i32
  }
}

</mosaic_0001>

<bundles_post_ra>
// kernel: tpu_custom_call.1
= control target key start
LH: loop header
LB: loop body
LE: loop exit
PB: predicated region body
PF: predicated region fallthrough
CT: control target
= control target key end

     0   :  { %s2753_s0 = inlined_call_operand.hbm [shape: f32[2,16,128], index: 0, kind: input, shape index: {}]   ;;  %s2754_s1 = inlined_call_operand.hbm [shape: f32[2,1,8,128], index: 1, kind: input, shape index: {}]   ;;  %s2755_s2 = inlined_call_operand.hbm [shape: f32[3,128,128], index: 2, kind: input, shape index: {}]   ;;  %s2756_s3 = inlined_call_operand.vmem [shape: f32[1,128], index: 3, kind: input, shape index: {}]   ;;  %s2757_s4 = inlined_call_operand.hbm [shape: f32[3,128,128], index: 4, kind: input, shape index: {}]   ;;  %s2758_s5 = inlined_call_operand.vmem [shape: f32[1,128], index: 5, kind: input, shape index: {}]   ;;  %s2759_s6 = inlined_call_operand.hbm [shape: f32[128,128], index: 6, kind: input, shape index: {}]   ;;  %s2760_s7 = inlined_call_operand.hbm [shape: f32[2,16,128], index: 7, kind: output, shape index: {}]  }
   0x1   :  { %2770 = sst [smem:[#allocation21_spill]] %s2753_s0 }
   0x2   :  { %2771 = sst [smem:[#allocation22_spill]] %s2755_s2 }
   0x3   :  { %2772 = sst [smem:[#allocation23_spill]] %s2757_s4 }
   0x4   :  { %2773 = sst [smem:[#allocation24_spill]] %s2759_s6 }
   0x5   :  { %2774 = sst [smem:[#allocation25_spill]] %s2760_s7 }
   0x6   :  { %12 = vsyncpa [#allocation5], 0 }
   0x7   :  { %14 = vsyncpa [#allocation5 + $0x1], 0 }
   0x8   :  { %15 = vsyncpa [#allocation8], 0 }
   0x9   :  { %17 = vsyncpa [#allocation8 + $0x1], 0 }
   0xa   :  { %18 = vsyncpa [#allocation11], 0 }
   0xb   :  { %19 = vsyncpa [#allocation6], 0 }
   0xc   :  { %21 = vsyncpa [#allocation6 + $0x1], 0  ;;  %s2343_s24 = smov 0   ;;  %s2345_s25 = smov 0  }
   0xd   :  { %s2347_s26 = smov 0   ;;  %s2349_s27 = smov 0  }
   0xe   :  { %s2351_s28 = smov 0   ;;  %s2353_s29 = smov 0  }
   0xf LB: > { %2775 = sst [smem:[#allocation19_spill]] %s2268_s24  ;;  %s2374_s30 = sadd.s32 4294967295, %s2288_s29   ;;  %s2288_s29 = sphi %s2353_s29, %s27_s29   ;;  %s2284_s28 = sphi %s2351_s28, %s2808_s28   ;;  %s2280_s27 = sphi %s2349_s27, %s2807_s27   ;;  %s2276_s26 = sphi %s2347_s26, %s2806_s26   ;;  %s2272_s25 = sphi %s2345_s25, %s2805_s25   ;;  %s2268_s24 = sphi %s2343_s24, %s2804_s24  }
  0x10   : > { %s1317_s8 = sadd.s32 4294967294, %s2288_s29   ;;  %p61_p0 = scmp.ne.s32.totalorder %s2272_s25, %s2268_s24 }
  0x11   : > { %p2761_p1 = scmp.eq.s32.totalorder %s2374_s30, 0  ;;  %p226_p3 = scmp.eq.s32.totalorder %s1317_s8, 1 }
  0x12   : > { %p1318_p5 = scmp.ge.s32.totalorder %s2288_s29, 1  ;;  %p233_p7 = scmp.lt.s32.totalorder %s2288_s29, 3 }
  0x13   : > { %p2383_p4 = por %p2761_p1, %p61_p0  ;;  %p2388_p6 = por %p226_p3, %p61_p0 }
  0x14   : > { %p2393_p8 = pnand %p1318_p5, %p233_p7  ;;  %s2290_s12 = smov [#allocation9]  }
  0x15   : > { %s2776_s9 = scalar_select %p2383_p4, 1, 0 }
  0x16   : > { %s2777_s10 = scalar_select %p2388_p6, 1, 0 }
  0x17   : > { %s2779_s11 = scalar_select %p2393_p8, 1, 0 }
  0x18   : > { %2778 = sst [smem:[#allocation20_spill]] %s2777_s10  ;;  %s245_s13 = sshll.u32 %s2290_s12, 4  ;;  %s2397_s13 = int_to_ptr.vmem [resolvable:$true] %s245_s13 }
  0x19   : > { %p1962_p9 = pneg %p2393_p8  ;;  %s2291_s15 = smov [#allocation10]  }
  0x1a   : > { %s261_s16 = sshll.u32 %s2291_s15, 4  ;;  %s2292_s17 = smov [#allocation12]   ;;  %s2408_s16 = int_to_ptr.vmem [resolvable:$true] %s261_s16 }
  0x1b   : > { %p2404_p11 = pnand %p1962_p9, %p2761_p1  ;;  %s2410_s18 = sshll.u32 %s2292_s17, 4  ;;  %s278_s18 = int_to_ptr.vmem [resolvable:$true] %s2410_s18 }
  0x1c   : > { %s2781_s2 = sld [smem:[#allocation22_spill]] }
  0x1d   : > { %p2420_p13 = pneg %p2404_p11 }
  0x22   : > { %s2050_s21 = scalar_lea.hbm %s2781_s2, 6144 }
  0x23   : > { %p2051_p12 = scmp.ne.s32.totalorder %s2781_s2, %s2050_s21  ;;  %p2057_p5 = scmp.lt.u32.totalorder %s2050_s21, %s2781_s2 }
  0x25   : > { %p2053_p0 = pnand %p2420_p13, %p2051_p12 }
  0x27   : > { %p2054_p3 = pneg %p2053_p0 }
  0x29   : > { %p2059_p7 = pnand %p2057_p5, %p2054_p3 }
  0x2b   : > { %2062 = shalt.err (!%p2059_p7)
}
  0x2c   : > { %s2063_s17 = scalar_lea.vmem %s2397_s13, 6144  ;;  %p2071_p2 = scmp.lt.s32.totalorder %s2397_s13, %s2397_s13 }
  0x2d   : > { %p2064_p9 = scmp.ne.s32.totalorder %s2397_s13, %s2063_s17  ;;  %p2072_p6 = scmp.lt.s32.totalorder %s2063_s17, %s2063_s17 }
  0x2f   : > { %p2066_p10 = pnand %p2064_p9, %p2420_p13  ;;  %p2073_p12 = por %p2072_p6, %p2071_p2 }
  0x31   : > { %p2067_p1 = pneg %p2066_p10 }
  0x33   : > { %p2074_p0 = pnand %p2073_p12, %p2067_p1 }
  0x35   : > { %2077 = shalt.err (!%p2074_p0)
}
  0x36   : > { %s2767_s19 = smov 128   ;;  %s2768_s20 = smov 8  }
  0x37   : > { %1965 = dma.hbm_to_vmem [thread:$0]  (!%p2404_p11), %s2781_s2, 6144, %s2397_s13, [#allocation8], %s2767_s19, %s2767_s19, %s2768_s20  }
  0x38   : > { %s2783_s4 = sld [smem:[#allocation23_spill]] }
  0x3e   : > { %s2078_s15 = scalar_lea.hbm %s2783_s4, 6144 }
  0x3f   : > { %p2079_p1 = scmp.ne.s32.totalorder %s2783_s4, %s2078_s15  ;;  %p2085_p10 = scmp.lt.u32.totalorder %s2078_s15, %s2783_s4 }
  0x41   : > { %p2081_p2 = pnand %p2079_p1, %p2420_p13 }
  0x43   : > { %p2082_p6 = pneg %p2081_p2 }
  0x45   : > { %p2087_p3 = pnand %p2085_p10, %p2082_p6 }
  0x47   : > { %2090 = shalt.err (!%p2087_p3)
}
  0x48   : > { %s2091_s13 = scalar_lea.vmem %s2408_s16, 6144  ;;  %p2099_p12 = scmp.lt.s32.totalorder %s2408_s16, %s2408_s16 }
  0x49   : > { %p2092_p5 = scmp.ne.s32.totalorder %s2408_s16, %s2091_s13  ;;  %p2100_p0 = scmp.lt.s32.totalorder %s2091_s13, %s2091_s13 }
  0x4b   : > { %p2094_p7 = pnand %p2092_p5, %p2420_p13  ;;  %p2101_p1 = por %p2100_p0, %p2099_p12 }
  0x4d   : > { %p2095_p9 = pneg %p2094_p7 }
  0x4f   : > { %p2102_p2 = pnand %p2101_p1, %p2095_p9 }
  0x51   : > { %2105 = shalt.err (!%p2102_p2)
}
  0x52   : > { %1968 = dma.hbm_to_vmem [thread:$0]  (!%p2404_p11), %s2783_s4, 6144, %s2408_s16, [#allocation11], %s2767_s19, %s2767_s19, %s2768_s20  }
  0x53   : > { %s2784_s6 = sld [smem:[#allocation24_spill]] }
  0x59   : > { %s2106_s22 = scalar_lea.hbm %s2784_s6, 2048 }
  0x5a   : > { %p2107_p6 = scmp.ne.s32.totalorder %s2784_s6, %s2106_s22  ;;  %p2113_p5 = scmp.lt.u32.totalorder %s2106_s22, %s2784_s6 }
  0x5c   : > { %p2109_p10 = pnand %p2107_p6, %p2420_p13 }
  0x5e   : > { %p2110_p3 = pneg %p2109_p10 }
  0x60   : > { %p2115_p7 = pnand %p2113_p5, %p2110_p3 }
  0x62   : > { %2118 = shalt.err (!%p2115_p7)
}
  0x63   : > { %s2119_s13 = scalar_lea.vmem %s278_s18, 2048  ;;  %p2127_p1 = scmp.lt.s32.totalorder %s278_s18, %s278_s18 }
  0x64   : > { %p2120_p9 = scmp.ne.s32.totalorder %s278_s18, %s2119_s13  ;;  %p2128_p2 = scmp.lt.s32.totalorder %s2119_s13, %s2119_s13 }
  0x66   : > { %p2122_p12 = pnand %p2120_p9, %p2420_p13  ;;  %p2129_p4 = por %p2128_p2, %p2127_p1 }
  0x68   : > { %p2123_p0 = pneg %p2122_p12 }
  0x6a   : > { %p2130_p8 = pnand %p2129_p4, %p2123_p0 }
  0x6c   : > { %2133 = shalt.err (!%p2130_p8)
}
  0x6d   : > { %1971 = dma.hbm_to_vmem [thread:$0]  (!%p2404_p11), %s2784_s6, 2048, %s278_s18, [#allocation11], %s2767_s19, %s2767_s19, %s2768_s20  }
  0x6e   : > { %s48_s8 = sadd.s32 1, %s2276_s26  ;;  %s39_s14 = sadd.s32 1, %s2284_s28 }
  0x6f   : > { %p55_p4 = scmp.ne.s32.totalorder %s2276_s26, %s2272_s25  ;;  %p41_p8 = scmp.ge.s32.totalorder %s39_s14, 2 }
  0x70   : > { %p56_p13 = scmp.eq.s32.totalorder %s2288_s29, 0  ;;  %p2785_p6 = scmp.eq.s32.totalorder %s2374_s30, 1 }
  0x71   : > { %p1986_p3 = scmp.lt.s32.totalorder %s2288_s29, 2  ;;  %s2810_s14 = smov (%p41_p8, %s39_s14), 0 }
  0x72   : > { %p2499_p10 = por %p2785_p6, %p55_p4  ;;  %p57_p5 = por %p56_p13, %p55_p4 }
  0x73   : > { %s2507_s10 = sand.u32 1, %s2276_s26   ;;  %s43_s18 = ssub.s32 %s2284_s28, %s2810_s14 }
  0x74   : > { %s2786_s24 = scalar_select %p2499_p10, 1, 0 }
  0x75   : > { %p46_p11 = scmp.eq.s32.totalorder %s43_s18, 0  ;;  %s1323_s21 = sshll.u32 %s2507_s10, 4 }
  0x76   : > { %s1342_s22 = sshll.u32 %s2284_s28, 8  ;;  %s2787_s0 = sld [smem:[#allocation21_spill]] }
  0x77   : > { %s2514_s23 = scalar_select %p46_p11, %s2276_s26, %s48_s8  }
  0x78   : > { %s295_s13 = scalar_lea.vmem [#allocation4], %s1323_s21  ;;  %p2525_p7 = pnand %p1986_p3, %p57_p5 }
  0x79   : > { %s304_s16 = sshll.u32 %s295_s13, 4  ;;  %s1326_s18 = sshll.u32 %s2507_s10, 3  ;;  %s2521_s16 = int_to_ptr.vmem [resolvable:$true] %s304_s16 }
  0x7a   : > { %s292_s12 = scalar_lea.sflag [#allocation5], %s2507_s10  ;;  %p2136_p12 = pneg %p2525_p7 }
  0x7c   : > { %s2519_s17 = scalar_lea.hbm %s2787_s0, %s1342_s22  ;;  %s2139_s13 = scalar_lea.hbm %s2787_s0, 512 }
  0x7d   : > { %s2134_s22 = scalar_lea.hbm %s2519_s17, 256  ;;  %p2140_p2 = scmp.lt.u32.totalorder %s2519_s17, %s2787_s0 }
  0x7e   : > { %p2135_p9 = scmp.ne.s32.totalorder %s2519_s17, %s2134_s22  ;;  %p2141_p4 = scmp.lt.u32.totalorder %s2139_s13, %s2134_s22 }
  0x7f   : > { %p2143_p13 = scmp.lt.u32.totalorder %s2134_s22, %s2519_s17 }
  0x80   : > { %p2137_p0 = pnand %p2136_p12, %p2135_p9  ;;  %p2142_p8 = por %p2141_p4, %p2140_p2 }
  0x82   : > { %p2138_p1 = pneg %p2137_p0  ;;  %p2144_p6 = por %p2143_p13, %p2142_p8 }
  0x84   : > { %p2145_p3 = pnand %p2144_p6, %p2138_p1 }
  0x86   : > { %2148 = shalt.err (!%p2145_p3)
}
  0x87   : > { %s2149_s8 = scalar_lea.vmem %s2521_s16, 256  ;;  %s2295_s21 = smov [#allocation4]  }
  0x88   : > { %p2150_p5 = scmp.ne.s32.totalorder %s2521_s16, %s2149_s8  ;;  %s2154_s15 = sshll.u32 %s2295_s21, 4  ;;  %s2155_s15 = int_to_ptr.vmem [resolvable:$false] %s2154_s15 }
  0x89   : > { %s2156_s19 = scalar_lea.vmem %s2155_s15, 512  ;;  %p2157_p0 = scmp.lt.s32.totalorder %s2521_s16, %s2155_s15 }
  0x8a   : > { %p2152_p11 = pnand %p2150_p5, %p2136_p12  ;;  %p2158_p2 = scmp.lt.s32.totalorder %s2156_s19, %s2149_s8 }
  0x8c   : > { %p2153_p9 = pneg %p2152_p11  ;;  %p2159_p4 = por %p2158_p2, %p2157_p0 }
  0x8e   : > { %p2160_p8 = pnand %p2159_p4, %p2153_p9 }
  0x90   : > { %2163 = shalt.err (!%p2160_p8)
}
  0x91   : > { %s2789_s20 = smov 8   ;;  %s2790_s22 = smov 128  }
  0x92   : > { %1975 = dma.hbm_to_vmem [thread:$0]  (!%p2525_p7), %s2519_s17, 256, %s2521_s16, %s292_s12, %s2790_s22, %s2790_s22, %s2789_s20  }
  0x93   : > { %s1327_s13 = sshll.u32 %s2284_s28, 7  ;;  %s318_s19 = scalar_lea.vmem [#allocation7], %s1326_s18 }
  0x94   : > { %s2566_s15 = scalar_lea.hbm %s2754_s1, %s1327_s13  ;;  %s326_s0 = sshll.u32 %s318_s19, 4  ;;  %s327_s0 = int_to_ptr.vmem [resolvable:$true] %s326_s0 }
  0x95   : > { %s2791_s2 = sand.u32 1, %s2288_s29   ;;  %s2164_s6 = scalar_lea.hbm %s2566_s15, 128 }
  0x96   : > { %s315_s4 = scalar_lea.sflag [#allocation8], %s2791_s2  ;;  %p2165_p1 = scmp.ne.s32.totalorder %s2566_s15, %s2164_s6 }
  0x97   : > { %s2169_s12 = scalar_lea.hbm %s2754_s1, 256  ;;  %p2170_p3 = scmp.lt.u32.totalorder %s2566_s15, %s2754_s1 }
  0x98   : > { %p2167_p13 = pnand %p2165_p1, %p2136_p12  ;;  %p2171_p5 = scmp.lt.u32.totalorder %s2169_s12, %s2164_s6 }
  0x99   : > { %p2173_p9 = scmp.lt.u32.totalorder %s2164_s6, %s2566_s15 }
  0x9a   : > { %p2168_p6 = pneg %p2167_p13  ;;  %p2172_p11 = por %p2171_p5, %p2170_p3 }
  0x9c   : > { %p2174_p0 = por %p2173_p9, %p2172_p11 }
  0x9e   : > { %p2175_p2 = pnand %p2174_p0, %p2168_p6 }
  0xa0   : > { %2178 = shalt.err (!%p2175_p2)
}
  0xa1   : > { %s2179_s2 = scalar_lea.vmem %s327_s0, 128  ;;  %s2296_s18 = smov [#allocation7]  }
  0xa2   : > { %p2180_p4 = scmp.ne.s32.totalorder %s327_s0, %s2179_s2  ;;  %s2184_s22 = sshll.u32 %s2296_s18, 4  ;;  %s2185_s22 = int_to_ptr.vmem [resolvable:$false] %s2184_s22 }
  0xa3   : > { %s2186_s13 = scalar_lea.vmem %s2185_s22, 256  ;;  %p2187_p13 = scmp.lt.s32.totalorder %s327_s0, %s2185_s22 }
  0xa4   : > { %p2182_p8 = pnand %p2180_p4, %p2136_p12  ;;  %p2188_p10 = scmp.lt.s32.totalorder %s2186_s13, %s2179_s2 }
  0xa6   : > { %p2183_p1 = pneg %p2182_p8  ;;  %p2189_p3 = por %p2188_p10, %p2187_p13 }
  0xa8   : > { %p2190_p5 = pnand %p2189_p3, %p2183_p1 }
  0xaa   : > { %2193 = shalt.err (!%p2190_p5)
}
  0xab   : > { %1978 = dma.hbm_to_vmem [thread:$0]  (!%p2525_p7), %s2566_s15, 128, %s327_s0, %s315_s4  }
  0xac   : > { %p2792_p6 = scmp.ne.s32.totalorder %s2779_s11, 0 }
  0xad   : > { %s2594_s6 = sand.u32 (!%p2792_p6), 1, %s2272_s25   ;;  %p2793_p10 = scmp.ne.s32.totalorder (!%p2792_p6), %s2776_s9, 0 }
  0xae   : > { %335 = sbr.rel (%p2792_p6) target bundleno = 853 (0x355), region = 48  ;;  %s1329_s21 = sshll.u32 (!%p2792_p6), %s2594_s6, 4 }
  0xaf   : > { %s338_s8 = scalar_lea.sflag (!%p2792_p6), [#allocation5], %s2594_s6  ;;  %s2600_s19 = scalar_lea.vmem (!%p2792_p6), [#allocation4], %s1329_s21 }
  0xb5   : > { %2247 = dma.done.wait (%p2793_p10), %s338_s8, 256  }
  0xb6   : > { %2249 = vsyncadd (%p2793_p10), %s338_s8, 4294967040  ;;  %s346_s0 = sand.u32 1, %s2374_s30   ;;  %s1330_s4 = sshll.u32 %s2594_s6, 3 }
  0xb7   : > { %s347_s11 = scalar_lea.sflag [#allocation8], %s346_s0  ;;  %s2608_s7 = scalar_lea.vmem [#allocation7], %s1330_s4 }
  0xb8   : > { %2251 = dma.done.wait (%p2793_p10), %s347_s11, 128  }
  0xb9   : > { %2253 = vsyncadd (%p2793_p10), %s347_s11, 4294967168  ;;  %p2794_p7 = scmp.eq.s32.totalorder %s2374_s30, 0 }
  0xbb   : > { %2255 = dma.done.wait (%p2794_p7), [#allocation8], 6144   ;;  %p2795_p12 = pmov %p2794_p7 }
  0xbc   : > { %p2796_p11 = pmov %p2794_p7 }
  0xbd   : > { %2257 = vsyncadd (%p2795_p12), [#allocation8], 4294961152 }
  0xbe   : > { %2259 = dma.done.wait (%p2796_p11), [#allocation11], 8192   ;;  %p2797_p9 = pmov %p2794_p7 }
  0xbf   : > { %v2297_v0 = vmov 0.0|0.0   ;;  %vm2298_vm0 = vmmov 0   ;;  %v2299_v1 = vmov 0.0   ;;  %v443_v2 = vld [vmem:[#allocation9 + $0x80] sm:$0xff]  ;;  %v444_v3 = vld [vmem:[#allocation9 + $0x88] sm:$0xff]  ;;  %v445_v4 = vld [vmem:[#allocation9 + $0x90] sm:$0xff] }
  0xc0   : > { %2261 = vsyncadd (%p2797_p9), [#allocation11], 4294959104  ;;  %1736 = vmatprep.subr.bf16.mxu0 %v2297_v0  ;;  %1505 = vmatprep.mubr.msk.f32.mxu0 %vm2298_vm0, %v2299_v1  ;;  %v1737_v5 = vpack.c.bf16 %v444_v3, %v443_v2  ;;  %v446_v6 = vld [vmem:[#allocation9 + $0x98] sm:$0xff]  ;;  %v447_v8 = vld [vmem:[#allocation9 + $0xa0] sm:$0xff]  ;;  %s397_s16 = scalar_lea.vmem [#allocation13], %s1329_s21  ;;  %s1343_s10 = sshll.u32 %s2280_s27, 8 }
  0xc1   : > { %v1740_v7 = vpack.c.bf16 %v446_v6, %v445_v4  ;;  %v448_v9 = vld [vmem:[#allocation9 + $0xa8] sm:$0xff]  ;;  %v400_v10 = vld [vmem:[%s2608_s7] sm:$0x3]  ;;  %v415_v22 = vld [vmem:[%s2608_s7 + $0x2] sm:$0x3]  ;;  %s1177_s12 = sshll.u32 %s397_s16, 4  ;;  %s2699_s12 = int_to_ptr.vmem [resolvable:$true] %s1177_s12 }
  0xc2   : > { %1738 = vmatpush3.bf16.msra.mxu0 %v1737_v5  ;;  %v2628_v11 = vld [vmem:[%s2600_s19] sm:$0xff]  ;;  %vm401_vm1 = vcmp.ge.f32.partialorder %v400_v10, 0.0  ;;  %v402_v12 = vmul.f32 0.2, %v400_v10  ;;  %v1743_v13 = vpack.c.bf16 %v448_v9, %v447_v8  ;;  %v450_v16 = vld [vmem:[#allocation9 + $0xb8] sm:$0xff]  ;;  %v452_v24 = vld [vmem:[#allocation9 + $0xc8] sm:$0xff] }
  0xc3   : > { %1739 = vmatprep.subr.bf16.mxu0 %v2297_v0  ;;  %vm407_vm2 = vcmp.ge.f32.partialorder %v2628_v11, 0.0  ;;  %v409_v14 = vmul.f32 0.2, %v2628_v11  ;;  %v449_v15 = vld [vmem:[#allocation9 + $0xb0] sm:$0xff]  ;;  %v2638_v19 = vld [vmem:[%s2600_s19 + $0x8] sm:$0xff]  ;;  %v451_v23 = vld [vmem:[#allocation9 + $0xc0] sm:$0xff] }
  0xc4   : > { %v403_v17 = vsel %vm401_vm1, %v400_v10, %v402_v12  ;;  %v1746_v20 = vpack.c.bf16 %v450_v16, %v449_v15  ;;  %vm408_vm3 = vcmp.ge.f32.partialorder %v2638_v19, 0.0  ;;  %v410_v21 = vmul.f32 0.2, %v2638_v19  ;;  %v453_v29 = vld [vmem:[#allocation9 + $0xd0] sm:$0xff]  ;;  %v454_v30 = vld [vmem:[#allocation9 + $0xd8] sm:$0xff]  ;;  %v455_v32 = vld [vmem:[#allocation9 + $0xe0] sm:$0xff] }
  0xc5   : > { %404 = vst [vmem:[#allocation2] sm:$0x3] %v403_v17  ;;  %v2634_v18 = vsel %vm407_vm2, %v2628_v11, %v409_v14  ;;  %vm416_vm4 = vcmp.ge.f32.partialorder %v415_v22, 0.0  ;;  %v417_v25 = vmul.f32 0.2, %v415_v22  ;;  %v1749_v28 = vpack.c.bf16 %v452_v24, %v451_v23  ;;  %v456_v33 = vld [vmem:[#allocation9 + $0xe8] sm:$0xff] }
  0xc6   : > { %1741 = vmatpush3.bf16.msra.mxu0 %v1740_v7  ;;  %413 = vst [vmem:[#allocation2 + $0x2] sm:$0xff] %v2634_v18  ;;  %v2645_v26 = vsel %vm408_vm3, %v2638_v19, %v410_v21  ;;  %v1752_v31 = vpack.c.bf16 %v454_v30, %v453_v29  ;;  %v1755_v34 = vpack.c.bf16 %v456_v33, %v455_v32  ;;  %v457_v35 = vld [vmem:[#allocation9 + $0xf0] sm:$0xff]  ;;  %v458_v36 = vld [vmem:[#allocation9 + $0xf8] sm:$0xff]  ;;  %v423_v38 = vld [vmem:[#allocation9] sm:$0xff]  ;;  %s2798_s18 = sld [smem:[#allocation25_spill]]  ;;  %s1162_s13 = scalar_lea.sflag [#allocation6], %s2594_s6 }
  0xc7   : > { %1742 = vmatprep.subr.bf16.mxu0 %v2297_v0  ;;  %414 = vst [vmem:[#allocation2 + $0xa] sm:$0xff] %v2645_v26  ;;  %v418_v27 = vsel %vm416_vm4, %v415_v22, %v417_v25  ;;  %v1758_v37 = vpack.c.bf16 %v458_v36, %v457_v35  ;;  %v424_v39 = vld [vmem:[#allocation9 + $0x8] sm:$0xff]  ;;  %v425_v42 = vld [vmem:[#allocation9 + $0x10] sm:$0xff]  ;;  %v426_v43 = vld [vmem:[#allocation9 + $0x18] sm:$0xff]  ;;  %s2194_s21 = scalar_lea.vmem %s2699_s12, 256  ;;  %p2799_p2 = scmp.ne.s32.totalorder %s2786_s24, 0 }
  0xc8   : > { %419 = vst [vmem:[#allocation2 + $0x12] sm:$0x3] %v418_v27  ;;  %v1761_v41 = vpack.c.bf16 %v424_v39, %v423_v38  ;;  %v1764_v44 = vpack.c.bf16 %v426_v43, %v425_v42  ;;  %v427_v46 = vld [vmem:[#allocation9 + $0x20] sm:$0xff]  ;;  %v428_v47 = vld [vmem:[#allocation9 + $0x28] sm:$0xff]  ;;  %v429_v50 = vld [vmem:[#allocation9 + $0x30] sm:$0xff]  ;;  %p2195_p0 = scmp.ne.s32.totalorder %s2699_s12, %s2194_s21  ;;  %s2300_s27 = smov [#allocation13]  }
  0xc9   : > { %v1767_v48 = vpack.c.bf16 %v428_v47, %v427_v46  ;;  %v430_v51 = vld [vmem:[#allocation9 + $0x38] sm:$0xff]  ;;  %v431_v53 = vld [vmem:[#allocation9 + $0x40] sm:$0xff]  ;;  %v432_v54 = vld [vmem:[#allocation9 + $0x48] sm:$0xff]  ;;  %s2198_s8 = sshll.u32 %s2300_s27, 4  ;;  %s2199_s8 = int_to_ptr.vmem [resolvable:$false] %s2198_s8 }
  0xca   : > { %1744 = vmatpush3.bf16.msra.mxu0 %v1743_v13  ;;  %v1770_v52 = vpack.c.bf16 %v430_v51, %v429_v50  ;;  %v1773_v55 = vpack.c.bf16 %v432_v54, %v431_v53  ;;  %v433_v56 = vld [vmem:[#allocation9 + $0x50] sm:$0xff]  ;;  %v434_v57 = vld [vmem:[#allocation9 + $0x58] sm:$0xff]  ;;  %v435_v59 = vld [vmem:[#allocation9 + $0x60] sm:$0xff]  ;;  %p2196_p4 = pnand %p2195_p0, %p2799_p2  ;;  %s2200_s19 = scalar_lea.vmem %s2199_s8, 512 }
  0xcb   : > { %1745 = vmatprep.subr.bf16.mxu0 %v2297_v0  ;;  %v1776_v58 = vpack.c.bf16 %v434_v57, %v433_v56  ;;  %v436_v60 = vld [vmem:[#allocation9 + $0x68] sm:$0xff]  ;;  %v437_v62 = vld [vmem:[#allocation9 + $0x70] sm:$0xff]  ;;  %v438_v63 = vld [vmem:[#allocation9 + $0x78] sm:$0xff]  ;;  %p2201_p1 = scmp.lt.s32.totalorder %s2699_s12, %s2199_s8  ;;  %p2202_p13 = scmp.lt.s32.totalorder %s2200_s19, %s2194_s21 }
  0xcc   : > { %v1779_v61 = vpack.c.bf16 %v436_v60, %v435_v59  ;;  %v1782_v2 = vpack.c.bf16 %v438_v63, %v437_v62  ;;  %v623_v3 = vld [vmem:[#allocation9 + $0x100] sm:$0xff]  ;;  %v624_v4 = vld [vmem:[#allocation9 + $0x108] sm:$0xff]  ;;  %v625_v7 = vld [vmem:[#allocation9 + $0x110] sm:$0xff]  ;;  %s2704_s22 = scalar_lea.hbm %s2798_s18, %s1343_s10  ;;  %p2197_p8 = pneg %p2196_p4 }
  0xcd   : > { %v439_v40 = vld [vmem:[#allocation2 + $0x1] sm:$0xff]  ;;  %v1785_v6 = vpack.c.bf16 %v624_v4, %v623_v3  ;;  %v626_v8 = vld [vmem:[#allocation9 + $0x118] sm:$0xff]  ;;  %v629_v16 = vld [vmem:[#allocation9 + $0x130] sm:$0xff]  ;;  %p2203_p3 = por %p2202_p13, %p2201_p1 }
  0xce   : > { %1747 = vmatpush3.bf16.msra.mxu0 %v1746_v20  ;;  %v440_v45 = vld [vmem:[#allocation2 + $0x9] sm:$0xff]  ;;  %v420_v5 = vld [vmem:[#allocation2] sm:$0xff]  ;;  %v1788_v10 = vpack.c.bf16 %v626_v8, %v625_v7  ;;  %v630_v17 = vld [vmem:[#allocation9 + $0x138] sm:$0xff] }
  0xcf   : > { %1748 = vmatprep.subr.bf16.mxu0 %v2297_v0  ;;  %v441_v49 = vld [vmem:[#allocation2 + $0x11] sm:$0x3]  ;;  %v421_v9 = vld [vmem:[#allocation2 + $0x8] sm:$0xff]  ;;  %v627_v12 = vld [vmem:[#allocation9 + $0x120] sm:$0xff]  ;;  %v1794_v20 = vpack.c.bf16 %v630_v17, %v629_v16  ;;  %p2204_p5 = pnand %p2203_p3, %p2197_p8 }
  0xd0   : > { %v628_v13 = vld [vmem:[#allocation9 + $0x128] sm:$0xff]  ;;  %v422_v14 = vld [vmem:[#allocation2 + $0x10] sm:$0x3]  ;;  %v631_v21 = vld [vmem:[#allocation9 + $0x140] sm:$0xff] }
  0xd1   : > { %v1791_v15 = vpack.c.bf16 %v628_v13, %v627_v12  ;;  %v632_v22 = vld [vmem:[#allocation9 + $0x148] sm:$0xff]  ;;  %v633_v24 = vld [vmem:[#allocation9 + $0x150] sm:$0xff]  ;;  %v634_v25 = vld [vmem:[#allocation9 + $0x158] sm:$0xff]  ;;  %v743_v12 = vlaneseq }
  0xd2   : > { %1750 = vmatpush3.bf16.msra.mxu0 %v1749_v28  ;;  %v1797_v23 = vpack.c.bf16 %v632_v22, %v631_v21  ;;  %v1800_v27 = vpack.c.bf16 %v634_v25, %v633_v24  ;;  %v635_v28 = vld [vmem:[#allocation9 + $0x160] sm:$0xff]  ;;  %v636_v29 = vld [vmem:[#allocation9 + $0x168] sm:$0xff]  ;;  %v638_v32 = vld [vmem:[#allocation9 + $0x178] sm:$0xff] }
  0xd3   : > { %1751 = vmatprep.subr.bf16.mxu0 %v2297_v0  ;;  %v1803_v30 = vpack.c.bf16 %v636_v29, %v635_v28  ;;  %v793_v35 = vld [vmem:[#allocation10 + $0x80] sm:$0xff]  ;;  %v794_v36 = vld [vmem:[#allocation10 + $0x88] sm:$0xff]  ;;  %v796_v39 = vld [vmem:[#allocation10 + $0x98] sm:$0xff]  ;;  %v744_v13 = vshrl.u32 %v743_v12, 7 }
  0xd4   : > { %v1808_v38 = vpack.c.bf16 %v794_v36, %v793_v35  ;;  %v800_v42 = vld [vmem:[#allocation10 + $0xb8] sm:$0xff]  ;;  %v801_v43 = vld [vmem:[#allocation10 + $0xc0] sm:$0xff]  ;;  %v803_v46 = vld [vmem:[#allocation10 + $0xd0] sm:$0xff] }
  0xd5   : > { %v804_v47 = vld [vmem:[#allocation10 + $0xd8] sm:$0xff]  ;;  %v806_v50 = vld [vmem:[#allocation10 + $0xe8] sm:$0xff]  ;;  %v748_v16 = vadd.s32 4294967295, %v744_v13  ;;  %v970_v12 = vld [vmem:[#allocation10 + $0x140] sm:$0xff] }
  0xd6   : > { %1753 = vmatpush3.bf16.msra.mxu0 %v1752_v31  ;;  %v637_v31 = vld [vmem:[#allocation9 + $0x170] sm:$0xff]  ;;  %1809 = vmatprep.subr.bf16.mxu1 %v1808_v38  ;;  %v808_v53 = vld [vmem:[#allocation10 + $0xf8] sm:$0xff]  ;;  %v775_v56 = vld [vmem:[#allocation10 + $0x8] sm:$0xff] }
  0xd7   : > { %1754 = vmatprep.subr.bf16.mxu0 %v2297_v0  ;;  %v1806_v33 = vpack.c.bf16 %v638_v32, %v637_v31  ;;  %1811 = vmatpush3.bf16.msra.mxu1 %v1808_v38  ;;  %vm751_vm5 = vcmp.ge.s32.totalorder %v748_v16, 0  ;;  %v973_v16 = vld [vmem:[#allocation10 + $0x158] sm:$0xff] }
  0xda   : > { %1756 = vmatpush3.bf16.msra.mxu0 %v1755_v34  ;;  %v621_v34 = vld [vmem:[#allocation2 + $0x12] sm:$0x3] }
  0xdb   : > { %1757 = vmatprep.subr.bf16.mxu0 %v2297_v0 }
  0xde   : > { %1759 = vmatpush3.bf16.msra.mxu0 %v1758_v37  ;;  %v795_v37 = vld [vmem:[#allocation10 + $0x90] sm:$0xff] }
  0xdf   : > { %1760 = vmatprep.subr.bf16.mxu0 %v2297_v0 }
  0xe1   : > { %1506 = vmatmul.mubr.f32.vlgmr.msra.gmra.mrb[0].mxu0 %v439_v40  ;;  %v1812_v40 = vpack.c.bf16 %v796_v39, %v795_v37 }
  0xe2   : > { %1762 = vmatpush3.bf16.msra.mxu0 %v1761_v41  ;;  %1508 = vmatprep.mubr.msk.f32.mxu0 %vm2298_vm0, %v2299_v1 }
  0xe3   : > { %1763 = vmatprep.subr.bf16.mxu0 %v2297_v0  ;;  %1813 = vmatprep.subr.bf16.mxu1 %v1812_v40 }
  0xe4   : > { %1815 = vmatpush3.bf16.msra.mxu1 %v1812_v40 }
  0xe5   : > { %1509 = vmatmul.mubr.f32.gmra.mrb[2].mxu0 %v440_v45 }
  0xe6   : > { %1765 = vmatpush3.bf16.msra.mxu0 %v1764_v44  ;;  %1511 = vmatprep.mubr.msk.f32.mxu0 %vm2298_vm0, %v2299_v1  ;;  %v802_v44 = vld [vmem:[#allocation10 + $0xc8] sm:$0xff] }
  0xe7   : > { %1766 = vmatprep.subr.bf16.mxu0 %v2297_v0  ;;  %v1824_v45 = vpack.c.bf16 %v802_v44, %v801_v43  ;;  %v779_v43 = vld [vmem:[#allocation10 + $0x28] sm:$0xff] }
  0xe9   : > { %1512 = vmatmul.mubr.f32.gmra.mrb[4].mxu0 %v441_v49  ;;  %v805_v49 = vld [vmem:[#allocation10 + $0xe0] sm:$0xff] }
  0xea   : > { %1768 = vmatpush3.bf16.msra.mxu0 %v1767_v48  ;;  %1546 = vmatprep.mubr.msk.f32.mxu0 %vm2298_vm0, %v2299_v1  ;;  %v1828_v48 = vpack.c.bf16 %v804_v47, %v803_v46  ;;  %v1832_v51 = vpack.c.bf16 %v806_v50, %v805_v49  ;;  %v781_v46 = vld [vmem:[#allocation10 + $0x38] sm:$0xff]  ;;  %v783_v49 = vld [vmem:[#allocation10 + $0x48] sm:$0xff] }
  0xeb   : > { %1769 = vmatprep.subr.bf16.mxu0 %v2297_v0 }
  0xee   : > { %1771 = vmatpush3.bf16.msra.mxu0 %v1770_v52  ;;  %v807_v52 = vld [vmem:[#allocation10 + $0xf0] sm:$0xff] }
  0xef   : > { %1772 = vmatprep.subr.bf16.mxu0 %v2297_v0  ;;  %v1836_v54 = vpack.c.bf16 %v808_v53, %v807_v52  ;;  %v785_v52 = vld [vmem:[#allocation10 + $0x58] sm:$0xff] }
  0xf2   : > { %1774 = vmatpush3.bf16.msra.mxu0 %v1773_v55  ;;  %v774_v55 = vld [vmem:[#allocation10] sm:$0xff] }
  0xf3   : > { %1775 = vmatprep.subr.bf16.mxu0 %v2297_v0  ;;  %v1840_v57 = vpack.c.bf16 %v775_v56, %v774_v55  ;;  %v787_v55 = vld [vmem:[#allocation10 + $0x68] sm:$0xff] }
  0xf6   : > { %1777 = vmatpush3.bf16.msra.mxu0 %v1776_v58 }
  0xf7   : > { %1778 = vmatprep.subr.bf16.mxu0 %v2297_v0 }
  0xfa   : > { %1780 = vmatpush3.bf16.msra.mxu0 %v1779_v61 }
  0xfb   : > { %1781 = vmatprep.subr.bf16.mxu0 %v2297_v0 }
  0xfe   : > { %1783 = vmatpush3.bf16.msra.mxu0 %v1782_v2 }
  0xff   : > { %1784 = vmatprep.subr.bf16.mxu0 %v2297_v0 }
 0x101   : > { %1547 = vmatmul.mubr.f32.vlgmr.msra.gmra.mrb[6].mxu0 %v420_v5 }
 0x102   : > { %1786 = vmatpush3.bf16.msra.mxu0 %v1785_v6  ;;  %1549 = vmatprep.mubr.msk.f32.mxu0 %vm2298_vm0, %v2299_v1 }
 0x103   : > { %1787 = vmatprep.subr.bf16.mxu0 %v2297_v0 }
 0x105   : > { %1550 = vmatmul.mubr.f32.gmra.mrb[8].mxu0 %v421_v9 }
 0x106   : > { %1789 = vmatpush3.bf16.msra.mxu0 %v1788_v10  ;;  %1552 = vmatprep.mubr.msk.f32.mxu0 %vm2298_vm0, %v2299_v1 }
 0x107   : > { %1790 = vmatprep.subr.bf16.mxu0 %v2297_v0 }
 0x109   : > { %1553 = vmatmul.mubr.f32.gmra.mrb[10].mxu0 %v422_v14 }
 0x10a   : > { %1792 = vmatpush3.bf16.msra.mxu0 %v1791_v15  ;;  %1587 = vmatprep.mubr.msk.f32.mxu0 %vm2298_vm0, %v2299_v1  ;;  %v1335_v15 = vld [vmem:[%s2756_s3] ss:$0 sm:$0xff] }
 0x10b   : > { %1793 = vmatprep.subr.bf16.mxu0 %v2297_v0 }
 0x10e   : > { %1795 = vmatpush3.bf16.msra.mxu0 %v1794_v20 }
 0x10f   : > { %1796 = vmatprep.subr.bf16.mxu0 %v2297_v0 }
 0x112   : > { %1798 = vmatpush3.bf16.msra.mxu0 %v1797_v23 }
 0x113   : > { %1799 = vmatprep.subr.bf16.mxu0 %v2297_v0 }
 0x116   : > { %1801 = vmatpush3.bf16.msra.mxu0 %v1800_v27  ;;  %v746_v27 = vadd.s32 16, %v744_v13  ;;  %v971_v13 = vld [vmem:[#allocation10 + $0x148] sm:$0xff] }
 0x117   : > { %1802 = vmatprep.subr.bf16.mxu0 %v2297_v0 }
 0x11a   : > { %1804 = vmatpush3.bf16.msra.mxu0 %v1803_v30 }
 0x11b   : > { %1805 = vmatprep.subr.bf16.mxu0 %v2297_v0  ;;  %v797_v0 = vld [vmem:[#allocation10 + $0xa0] sm:$0xff] }
 0x11e   : > { %1807 = vmatpush3.bf16.msra.mxu0 %v1806_v33 }
 0x121   : > { %1588 = vmatmul.mubr.f32.vlgmr.msra.gmra.mrb[12].mxu0 %v2634_v18  ;;  %v798_v18 = vld [vmem:[#allocation10 + $0xa8] sm:$0xff] }
 0x122   : > { %1590 = vmatprep.mubr.msk.f32.mxu0 %vm2298_vm0, %v2299_v1  ;;  %v1816_v41 = vpack.c.bf16 %v798_v18, %v797_v0  ;;  %v776_v18 = vld [vmem:[#allocation10 + $0x10] sm:$0xff] }
 0x124   : > { %1817 = vmatprep.subr.bf16.mxu1 %v1816_v41 }
 0x125   : > { %1591 = vmatmul.mubr.f32.gmra.mrb[14].mxu0 %v2645_v26  ;;  %1819 = vmatpush3.bf16.msra.mxu1 %v1816_v41  ;;  %v799_v26 = vld [vmem:[#allocation10 + $0xb0] sm:$0xff]  ;;  %v777_v41 = vld [vmem:[#allocation10 + $0x18] sm:$0xff] }
 0x126   : > { %1593 = vmatprep.mubr.msk.f32.mxu0 %vm2298_vm0, %v2299_v1  ;;  %v1820_v1 = vpack.c.bf16 %v800_v42, %v799_v26  ;;  %v1844_v26 = vpack.c.bf16 %v777_v41, %v776_v18  ;;  %v1076_v41 = vld [vmem:[#allocation12 + $0x50] sm:$0xff] }
 0x128   : > { %1821 = vmatprep.subr.bf16.mxu1 %v1820_v1 }
 0x129   : > { %1594 = vmatmul.mubr.f32.gmra.mrb[16].mxu0 %v621_v34  ;;  %1823 = vmatpush3.bf16.msra.mxu1 %v1820_v1  ;;  %v750_v34 = vadd.s32 4294967295, %v746_v27  ;;  %v778_v1 = vld [vmem:[#allocation10 + $0x20] sm:$0xff] }
 0x12a   : > { %1825 = vmatprep.subr.bf16.mxu1 %v1824_v45  ;;  %v1848_v44 = vpack.c.bf16 %v779_v43, %v778_v1  ;;  %v1066_v27 = vld [vmem:[#allocation12] sm:$0xff] }
 0x12b   : > { %vm756_vm9 = vcmp.lt.s32.totalorder %v750_v34, 16  ;;  %v1070_v34 = vld [vmem:[#allocation12 + $0x20] sm:$0xff] }
 0x12c   : > { %v1078_v1 = vld [vmem:[#allocation12 + $0x60] sm:$0xff] }
 0x12d   : > { %1827 = vmatpush3.bf16.msra.mxu1 %v1824_v45  ;;  %v780_v45 = vld [vmem:[#allocation10 + $0x30] sm:$0xff] }
 0x12e   : > { %1829 = vmatprep.subr.bf16.mxu1 %v1828_v48  ;;  %v1852_v47 = vpack.c.bf16 %v781_v46, %v780_v45  ;;  %v1081_v45 = vld [vmem:[#allocation12 + $0x78] sm:$0xff] }
 0x131   : > { %1831 = vmatpush3.bf16.msra.mxu1 %v1828_v48  ;;  %v782_v48 = vld [vmem:[#allocation10 + $0x40] sm:$0xff] }
 0x132   : > { %1833 = vmatprep.subr.bf16.mxu1 %v1832_v51  ;;  %v1856_v50 = vpack.c.bf16 %v783_v49, %v782_v48 }
 0x135   : > { %1835 = vmatpush3.bf16.msra.mxu1 %v1832_v51  ;;  %v784_v51 = vld [vmem:[#allocation10 + $0x50] sm:$0xff] }
 0x136   : > { %1837 = vmatprep.subr.bf16.mxu1 %v1836_v54  ;;  %v1860_v53 = vpack.c.bf16 %v785_v52, %v784_v51 }
 0x139   : > { %1839 = vmatpush3.bf16.msra.mxu1 %v1836_v54  ;;  %v786_v54 = vld [vmem:[#allocation10 + $0x60] sm:$0xff] }
 0x13a   : > { %1841 = vmatprep.subr.bf16.mxu1 %v1840_v57  ;;  %v1864_v56 = vpack.c.bf16 %v787_v55, %v786_v54 }
 0x1b4   : > { %v525_v58 = vpop.f32.mrb[0].mxu0 }
 0x1b5   : > { %v1507_v59 = vpop.f32.mrb[1].mxu0 }
 0x1b8   : > { %v530_v60 = vpop.f32.mrb[2].mxu0 }
 0x1b9   : > { %v1510_v61 = vpop.f32.mrb[3].mxu0 }
 0x1ba   : > { %v963_v61 = vld [vmem:[#allocation10 + $0x108] sm:$0xff] }
 0x1bc   : > { %v535_v62 = vpop.f32.mrb[4].mxu0 }
 0x1bd   : > { %v1513_v63 = vpop.f32.mrb[5].mxu0 }
 0x1be   : > { %v964_v63 = vld [vmem:[#allocation10 + $0x110] sm:$0xff] }
 0x1d4   : > { %v605_v2 = vpop.f32.mrb[6].mxu0 }
 0x1d5   : > { %v606_v3 = vadd.f32 %v605_v2, %v525_v58  ;;  %v1548_v4 = vpop.f32.mrb[7].mxu0  ;;  %v789_v58 = vld [vmem:[#allocation10 + $0x78] sm:$0xff] }
 0x1d6   : > { %v965_v2 = vld [vmem:[#allocation10 + $0x118] sm:$0xff]  ;;  %v966_v4 = vld [vmem:[#allocation10 + $0x120] sm:$0xff] }
 0x1d8   : > { %v610_v5 = vpop.f32.mrb[8].mxu0 }
 0x1d9   : > { %v611_v6 = vadd.f32 %v610_v5, %v530_v60  ;;  %v1551_v7 = vpop.f32.mrb[9].mxu0  ;;  %v962_v60 = vld [vmem:[#allocation10 + $0x100] sm:$0xff]  ;;  %v967_v5 = vld [vmem:[#allocation10 + $0x128] sm:$0xff] }
 0x1da   : > { %v1880_v7 = vpack.c.bf16 %v967_v5, %v966_v4 }
 0x1dc   : > { %v615_v8 = vpop.f32.mrb[10].mxu0 }
 0x1dd   : > { %v616_v9 = vadd.f32 %v615_v8, %v535_v62  ;;  %v1554_v10 = vpop.f32.mrb[11].mxu0  ;;  %v1872_v62 = vpack.c.bf16 %v963_v61, %v962_v60  ;;  %v968_v8 = vld [vmem:[#allocation10 + $0x130] sm:$0xff] }
 0x1f4   : > { %v705_v14 = vpop.f32.mrb[12].mxu0 }
 0x1f5   : > { %v719_v17 = vadd.f32 %v705_v14, %v606_v3  ;;  %v1589_v20 = vpop.f32.mrb[13].mxu0  ;;  %v1876_v3 = vpack.c.bf16 %v965_v2, %v964_v63  ;;  %v1888_v14 = vpack.c.bf16 %v971_v13, %v970_v12 }
 0x1f6   : > { %v974_v20 = vld [vmem:[#allocation10 + $0x160] sm:$0xff] }
 0x1f7   : > { %v729_v21 = vadd.f32 %v1335_v15, %v719_v17 }
 0x1f8   : > { %v710_v22 = vpop.f32.mrb[14].mxu0 }
 0x1f9   : > { %vm732_vm6 = vcmp.ge.f32.partialorder %v729_v21, 0.0  ;;  %v735_v23 = vmul.f32 0.2, %v729_v21  ;;  %v720_v24 = vadd.f32 %v710_v22, %v611_v6  ;;  %v1592_v25 = vpop.f32.mrb[15].mxu0 }
 0x1fb   : > { %v738_v28 = vsel %vm732_vm6, %v729_v21, %v735_v23  ;;  %v730_v29 = vadd.f32 %v1335_v15, %v720_v24  ;;  %v975_v21 = vld [vmem:[#allocation10 + $0x168] sm:$0xff]  ;;  %v976_v23 = vld [vmem:[#allocation10 + $0x170] sm:$0xff]  ;;  %v977_v24 = vld [vmem:[#allocation10 + $0x178] sm:$0xff] }
 0x1fc   : > { %v766_v30 = vsel %vm751_vm5, %v738_v28, 0.0  ;;  %v715_v31 = vpop.f32.mrb[16].mxu0  ;;  %v1896_v22 = vpack.c.bf16 %v975_v21, %v974_v20  ;;  %v1900_v25 = vpack.c.bf16 %v977_v24, %v976_v23 }
 0x1fd   : > { %769 = vst [vmem:[#allocation3] sm:$0xff] %v766_v30  ;;  %vm733_vm7 = vcmp.ge.f32.partialorder %v730_v29, 0.0  ;;  %v736_v32 = vmul.f32 0.2, %v730_v29  ;;  %v721_v33 = vadd.f32 %v715_v31, %v616_v9  ;;  %v1595_v35 = vpop.f32.mrb[17].mxu0  ;;  %v969_v9 = vld [vmem:[#allocation10 + $0x138] sm:$0xff] }
 0x1fe   : > { %v1884_v10 = vpack.c.bf16 %v969_v9, %v968_v8  ;;  %v1068_v30 = vld [vmem:[#allocation12 + $0x10] sm:$0xff]  ;;  %v1069_v31 = vld [vmem:[#allocation12 + $0x18] sm:$0xff]  ;;  %v1071_v35 = vld [vmem:[#allocation12 + $0x28] sm:$0xff] }
 0x1ff   : > { %v739_v36 = vsel %vm733_vm7, %v730_v29, %v736_v32  ;;  %v731_v37 = vadd.f32 %v1335_v15, %v721_v33  ;;  %v972_v15 = vld [vmem:[#allocation10 + $0x150] sm:$0xff]  ;;  %v1908_v32 = vpack.c.bf16 %v1069_v31, %v1068_v30 }
 0x200   : > { %770 = vst [vmem:[#allocation3 + $0x8] sm:$0xff] %v739_v36  ;;  %v1892_v17 = vpack.c.bf16 %v973_v16, %v972_v15 }
 0x201   : > { %vm734_vm8 = vcmp.ge.f32.partialorder %v731_v37, 0.0  ;;  %v737_v38 = vmul.f32 0.2, %v731_v37 }
 0x203   : > { %v740_v39 = vsel %vm734_vm8, %v731_v37, %v737_v38  ;;  %v1072_v37 = vld [vmem:[#allocation12 + $0x30] sm:$0xff]  ;;  %v1073_v38 = vld [vmem:[#allocation12 + $0x38] sm:$0xff] }
 0x204   : > { %v768_v40 = vsel %vm756_vm9, %v740_v39, 0.0  ;;  %v1916_v39 = vpack.c.bf16 %v1073_v38, %v1072_v37 }
 0x205   : > { %771 = vst [vmem:[#allocation3 + $0x10] sm:$0x3] %v768_v40  ;;  %v1074_v40 = vld [vmem:[#allocation12 + $0x40] sm:$0xff] }
 0x207   : > { %v790_v0 = vld [vmem:[#allocation3 + $0x1] sm:$0xff] }
 0x208   : > { %1628 = vmatprep.mubr.f32.mxu1 %v790_v0  ;;  %v959_v6 = vld [vmem:[#allocation3 + $0x2] sm:$0xff]  ;;  %v1075_v0 = vld [vmem:[#allocation12 + $0x48] sm:$0xff] }
 0x209   : > { %v1920_v18 = vpack.c.bf16 %v1075_v0, %v1074_v40 }
 0x20c   : > { %v791_v42 = vld [vmem:[#allocation3 + $0x9] sm:$0xff] }
 0x20d   : > { %1629 = vmatmul.mubr.f32.vlgmr.msra.gmra.mrb[0].mxu1 %v791_v42  ;;  %v960_v33 = vld [vmem:[#allocation3 + $0xa] sm:$0xff] }
 0x20e   : > { %1843 = vmatpush3.bf16.msra.mxu1 %v1840_v57  ;;  %2049 = vmatprep.mubr.msk.f32.mxu1 %vm751_vm5, %v738_v28  ;;  %v788_v57 = vld [vmem:[#allocation10 + $0x70] sm:$0xff]  ;;  %v1067_v28 = vld [vmem:[#allocation12 + $0x8] sm:$0xff] }
 0x20f   : > { %1845 = vmatprep.subr.bf16.mxu1 %v1844_v26  ;;  %v1868_v59 = vpack.c.bf16 %v789_v58, %v788_v57  ;;  %v1904_v29 = vpack.c.bf16 %v1067_v28, %v1066_v27 }
 0x212   : > { %1847 = vmatpush3.bf16.msra.mxu1 %v1844_v26  ;;  %v1077_v26 = vld [vmem:[#allocation12 + $0x58] sm:$0xff] }
 0x213   : > { %1849 = vmatprep.subr.bf16.mxu1 %v1848_v44  ;;  %v1924_v42 = vpack.c.bf16 %v1077_v26, %v1076_v41 }
 0x216   : > { %1851 = vmatpush3.bf16.msra.mxu1 %v1848_v44  ;;  %v1080_v44 = vld [vmem:[#allocation12 + $0x70] sm:$0xff] }
 0x217   : > { %1853 = vmatprep.subr.bf16.mxu1 %v1852_v47  ;;  %v1932_v46 = vpack.c.bf16 %v1081_v45, %v1080_v44 }
 0x21a   : > { %1855 = vmatpush3.bf16.msra.mxu1 %v1852_v47  ;;  %v1336_v47 = vld [vmem:[%s2758_s5] ss:$0 sm:$0xff] }
 0x21b   : > { %1857 = vmatprep.subr.bf16.mxu1 %v1856_v50 }
 0x21e   : > { %1859 = vmatpush3.bf16.msra.mxu1 %v1856_v50 }
 0x21f   : > { %1861 = vmatprep.subr.bf16.mxu1 %v1860_v53 }
 0x222   : > { %1863 = vmatpush3.bf16.msra.mxu1 %v1860_v53 }
 0x223   : > { %1865 = vmatprep.subr.bf16.mxu1 %v1864_v56 }
 0x226   : > { %1867 = vmatpush3.bf16.msra.mxu1 %v1864_v56 }
 0x227   : > { %1869 = vmatprep.subr.bf16.mxu1 %v1868_v59 }
 0x22a   : > { %1871 = vmatpush3.bf16.msra.mxu1 %v1868_v59 }
 0x22b   : > { %1873 = vmatprep.subr.bf16.mxu1 %v1872_v62 }
 0x22d   : > { %1664 = vmatmul.mubr.f32.vlgmr.msra.gmra.mrb[0].mxu1 %v739_v36  ;;  %v1912_v36 = vpack.c.bf16 %v1071_v35, %v1070_v34 }
 0x22e   : > { %1875 = vmatpush3.bf16.msra.mxu1 %v1872_v62  ;;  %1698 = vmatprep.mubr.f32.mxu1 %v959_v6 }
 0x22f   : > { %1877 = vmatprep.subr.bf16.mxu1 %v1876_v3 }
 0x232   : > { %1879 = vmatpush3.bf16.msra.mxu1 %v1876_v3 }
 0x233   : > { %1881 = vmatprep.subr.bf16.mxu1 %v1880_v7 }
 0x236   : > { %1883 = vmatpush3.bf16.msra.mxu1 %v1880_v7 }
 0x237   : > { %1885 = vmatprep.subr.bf16.mxu1 %v1884_v10 }
 0x23a   : > { %1887 = vmatpush3.bf16.msra.mxu1 %v1884_v10 }
 0x23b   : > { %1889 = vmatprep.subr.bf16.mxu1 %v1888_v14 }
 0x23e   : > { %1891 = vmatpush3.bf16.msra.mxu1 %v1888_v14 }
 0x23f   : > { %1893 = vmatprep.subr.bf16.mxu1 %v1892_v17 }
 0x242   : > { %1895 = vmatpush3.bf16.msra.mxu1 %v1892_v17 }
 0x243   : > { %1897 = vmatprep.subr.bf16.mxu1 %v1896_v22 }
 0x246   : > { %1899 = vmatpush3.bf16.msra.mxu1 %v1896_v22 }
 0x247   : > { %1901 = vmatprep.subr.bf16.mxu1 %v1900_v25 }
 0x24a   : > { %1903 = vmatpush3.bf16.msra.mxu1 %v1900_v25 }
 0x24b   : > { %1905 = vmatprep.subr.bf16.mxu1 %v1904_v29 }
 0x24d   : > { %1699 = vmatmul.mubr.f32.vlgmr.msra.gmra.mrb[0].mxu1 %v960_v33 }
 0x24e   : > { %1907 = vmatpush3.bf16.msra.mxu1 %v1904_v29  ;;  %1733 = vmatprep.mubr.f32.mxu1 %v2628_v11  ;;  %v1079_v11 = vld [vmem:[#allocation12 + $0x68] sm:$0xff] }
 0x24f   : > { %1909 = vmatprep.subr.bf16.mxu1 %v1908_v32  ;;  %v1928_v43 = vpack.c.bf16 %v1079_v11, %v1078_v1 }
 0x252   : > { %1911 = vmatpush3.bf16.msra.mxu1 %v1908_v32 }
 0x253   : > { %1913 = vmatprep.subr.bf16.mxu1 %v1912_v36 }
 0x256   : > { %1915 = vmatpush3.bf16.msra.mxu1 %v1912_v36 }
 0x257   : > { %1917 = vmatprep.subr.bf16.mxu1 %v1916_v39 }
 0x25a   : > { %1919 = vmatpush3.bf16.msra.mxu1 %v1916_v39 }
 0x25b   : > { %1921 = vmatprep.subr.bf16.mxu1 %v1920_v18 }
 0x25e   : > { %1923 = vmatpush3.bf16.msra.mxu1 %v1920_v18 }
 0x25f   : > { %1925 = vmatprep.subr.bf16.mxu1 %v1924_v42 }
 0x262   : > { %1927 = vmatpush3.bf16.msra.mxu1 %v1924_v42 }
 0x263   : > { %1929 = vmatprep.subr.bf16.mxu1 %v1928_v43 }
 0x266   : > { %1931 = vmatpush3.bf16.msra.mxu1 %v1928_v43 }
 0x267   : > { %1933 = vmatprep.subr.bf16.mxu1 %v1932_v46 }
 0x26a   : > { %1935 = vmatpush3.bf16.msra.mxu1 %v1932_v46 }
 0x26d   : > { %1734 = vmatmul.mubr.f32.vlgmr.msra.gmra.mrb[0].mxu1 %v2638_v19 }
 0x340   : > { %v1735_v48 = vpop.f32.mrb[0].mxu1 }
 0x341   : > { %v1936_v49 = vadd.f32 %v1735_v48, %v1336_v47  ;;  %v1148_v50 = vpop.f32.mrb[1].mxu1 }
 0x342   : > { %v1937_v51 = vadd.f32 %v1336_v47, %v1148_v50 }
 0x343   : > { %v1158_v52 = vmul.f32 0.70710677, %v1936_v49 }
 0x344   : > { %v1157_v19 = vmul.f32 0.70710677, %v1937_v51 }
 0x345   : > { %1160 = vst [vmem:[%s397_s16 + $0x8] sm:$0xff] %v1158_v52 }
 0x346   : > { %1159 = vst [vmem:[%s397_s16] sm:$0xff] %v1157_v19 }
 0x347   : > { %2207 = shalt.err (!%p2204_p5)
}
 0x348   : > { %s2208_s0 = scalar_lea.hbm %s2704_s22, 256  ;;  %s2212_s7 = scalar_lea.hbm %s2798_s18, 512 }
 0x349   : > { %p2209_p6 = scmp.ne.s32.totalorder %s2704_s22, %s2208_s0  ;;  %p2213_p12 = scmp.lt.u32.totalorder %s2704_s22, %s2798_s18 }
 0x34a   : > { %p2214_p11 = scmp.lt.u32.totalorder %s2212_s7, %s2208_s0  ;;  %p2216_p0 = scmp.lt.u32.totalorder %s2208_s0, %s2704_s22 }
 0x34b   : > { %p2210_p10 = pnand %p2209_p6, %p2799_p2 }
 0x34c   : > { %p2215_p9 = por %p2214_p11, %p2213_p12 }
 0x34d   : > { %p2211_p7 = pneg %p2210_p10 }
 0x34e   : > { %p2217_p4 = por %p2216_p0, %p2215_p9 }
 0x350   : > { %p2218_p8 = pnand %p2217_p4, %p2211_p7 }
 0x352   : > { %2221 = shalt.err (!%p2218_p8)
}
 0x353   : > { %s2301_s15 = smov 128   ;;  %s2302_s17 = smov 8  }
 0x354   : > { %1960 = dma.vmem_to_hbm [thread:$0]  (%p2799_p2), %s2699_s12, 256, %s2704_s22, %s1162_s13, %s2301_s15, %s2301_s15, %s2302_s17  }
 0x355 PF: > { %s2800_s16 = sld [smem:[#allocation19_spill]]  ;;  %s2801_s10 = sld [smem:[#allocation20_spill]] }
 0x356   : > { %p2803_p13 = scmp.ge.s32.totalorder %s2288_s29, 2 }
 0x35b   : > { %s1192_s20 = sand.u32 1, %s2800_s16   ;;  %p2802_p1 = scmp.ne.s32.totalorder %s2801_s10, 0 }
 0x35c   : > { %s1193_s2 = scalar_lea.sflag [#allocation6], %s1192_s20 }
 0x35d   : > { %p1980_p3 = pnand %p2803_p13, %p2802_p1 }
 0x35f   : > { %2263 = dma.done.wait (!%p1980_p3), %s1193_s2, 256  }
 0x360   : > { %2265 = vsyncadd (!%p1980_p3), %s1193_s2, 4294967040  ;;  %s27_s29 = sadd.s32 1, %s2288_s29   ;;  %s2804_s24 = smov %s2272_s25 }
 0x361   : > { %p24_p5 = scmp.ge.s32.totalorder %s27_s29, 4   ;;  %s2805_s25 = smov %s2276_s26 }
 0x362   : > { %s2806_s26 = smov %s2514_s23  ;;  %s2807_s27 = smov %s2284_s28 }
 0x363   : > { %s2808_s28 = smov %s2810_s14  ;;  %26 = sbr.rel (!%p24_p5) target bundleno = 15 (0xf), region = 122 }
 0x36a   :  { %1198 = vsyncpa [#allocation5], 1 }
 0x36b   :  { %1200 = vsyncpa [#allocation5 + $0x1], 1 }
 0x36c   :  { %1201 = vsyncpa [#allocation8], 1 }
 0x36d   :  { %1203 = vsyncpa [#allocation8 + $0x1], 1 }
 0x36e   :  { %1204 = vsyncpa [#allocation11], 1 }
 0x36f   :  { %1205 = vsyncpa [#allocation6], 1 }
 0x370   :  { %1207 = vsyncpa [#allocation6 + $0x1], 1 }

// kernel: tpu_custom_call.1
= control target key start
LH: loop header
LB: loop body
LE: loop exit
PB: predicated region body
PF: predicated region fallthrough
CT: control target
= control target key end

     0   :  { %s2753_s0 = inlined_call_operand.hbm [shape: f32[2,16,128], index: 0, kind: input, shape index: {}]   ;;  %s2754_s1 = inlined_call_operand.hbm [shape: f32[2,1,8,128], index: 1, kind: input, shape index: {}]   ;;  %s2755_s2 = inlined_call_operand.hbm [shape: f32[3,128,128], index: 2, kind: input, shape index: {}]   ;;  %s2756_s3 = inlined_call_operand.vmem [shape: f32[1,128], index: 3, kind: input, shape index: {}]   ;;  %s2757_s4 = inlined_call_operand.hbm [shape: f32[3,128,128], index: 4, kind: input, shape index: {}]   ;;  %s2758_s5 = inlined_call_operand.vmem [shape: f32[1,128], index: 5, kind: input, shape index: {}]   ;;  %s2759_s6 = inlined_call_operand.hbm [shape: f32[128,128], index: 6, kind: input, shape index: {}]   ;;  %s2760_s7 = inlined_call_operand.hbm [shape: f32[2,16,128], index: 7, kind: output, shape index: {}]  }
   0x1   :  { %2770 = sst [smem:[#allocation21_spill]] %s2753_s0 }
   0x2   :  { %2771 = sst [smem:[#allocation22_spill]] %s2755_s2 }
   0x3   :  { %2772 = sst [smem:[#allocation23_spill]] %s2757_s4 }
   0x4   :  { %2773 = sst [smem:[#allocation24_spill]] %s2759_s6 }
   0x5   :  { %2774 = sst [smem:[#allocation25_spill]] %s2760_s7 }
   0x6   :  { %12 = vsyncpa [#allocation5], 0 }
   0x7   :  { %14 = vsyncpa [#allocation5 + $0x1], 0 }
   0x8   :  { %15 = vsyncpa [#allocation8], 0 }
   0x9   :  { %17 = vsyncpa [#allocation8 + $0x1], 0 }
   0xa   :  { %18 = vsyncpa [#allocation11], 0 }
   0xb   :  { %19 = vsyncpa [#allocation6], 0 }
   0xc   :  { %21 = vsyncpa [#allocation6 + $0x1], 0  ;;  %s2343_s24 = smov 0   ;;  %s2345_s25 = smov 0  }
   0xd   :  { %s2347_s26 = smov 0   ;;  %s2349_s27 = smov 0  }
   0xe   :  { %s2351_s28 = smov 0   ;;  %s2353_s29 = smov 0  }
   0xf LB: > { %2775 = sst [smem:[#allocation19_spill]] %s2268_s24  ;;  %s2374_s30 = sadd.s32 4294967295, %s2288_s29   ;;  %s2288_s29 = sphi %s2353_s29, %s27_s29   ;;  %s2284_s28 = sphi %s2351_s28, %s2808_s28   ;;  %s2280_s27 = sphi %s2349_s27, %s2807_s27   ;;  %s2276_s26 = sphi %s2347_s26, %s2806_s26   ;;  %s2272_s25 = sphi %s2345_s25, %s2805_s25   ;;  %s2268_s24 = sphi %s2343_s24, %s2804_s24  }
  0x10   : > { %s1317_s8 = sadd.s32 4294967294, %s2288_s29   ;;  %p61_p0 = scmp.ne.s32.totalorder %s2272_s25, %s2268_s24 }
  0x11   : > { %p2761_p1 = scmp.eq.s32.totalorder %s2374_s30, 0  ;;  %p226_p3 = scmp.eq.s32.totalorder %s1317_s8, 1 }
  0x12   : > { %p1318_p5 = scmp.ge.s32.totalorder %s2288_s29, 1  ;;  %p233_p7 = scmp.lt.s32.totalorder %s2288_s29, 3 }
  0x13   : > { %p2383_p4 = por %p2761_p1, %p61_p0  ;;  %p2388_p6 = por %p226_p3, %p61_p0 }
  0x14   : > { %p2393_p8 = pnand %p1318_p5, %p233_p7  ;;  %s2290_s12 = smov [#allocation9]  }
  0x15   : > { %s2776_s9 = scalar_select %p2383_p4, 1, 0 }
  0x16   : > { %s2777_s10 = scalar_select %p2388_p6, 1, 0 }
  0x17   : > { %s2779_s11 = scalar_select %p2393_p8, 1, 0 }
  0x18   : > { %2778 = sst [smem:[#allocation20_spill]] %s2777_s10  ;;  %s245_s13 = sshll.u32 %s2290_s12, 4  ;;  %s2397_s13 = int_to_ptr.vmem [resolvable:$true] %s245_s13 }
  0x19   : > { %p1962_p9 = pneg %p2393_p8  ;;  %s2291_s15 = smov [#allocation10]  }
  0x1a   : > { %s261_s16 = sshll.u32 %s2291_s15, 4  ;;  %s2292_s17 = smov [#allocation12]   ;;  %s2408_s16 = int_to_ptr.vmem [resolvable:$true] %s261_s16 }
  0x1b   : > { %p2404_p11 = pnand %p1962_p9, %p2761_p1  ;;  %s2410_s18 = sshll.u32 %s2292_s17, 4  ;;  %s278_s18 = int_to_ptr.vmem [resolvable:$true] %s2410_s18 }
  0x1c   : > { %s2781_s2 = sld [smem:[#allocation22_spill]] }
  0x1d   : > { %p2420_p13 = pneg %p2404_p11 }
  0x22   : > { %s2050_s21 = scalar_lea.hbm %s2781_s2, 6144 }
  0x23   : > { %p2051_p12 = scmp.ne.s32.totalorder %s2781_s2, %s2050_s21  ;;  %p2057_p5 = scmp.lt.u32.totalorder %s2050_s21, %s2781_s2 }
  0x25   : > { %p2053_p0 = pnand %p2420_p13, %p2051_p12 }
  0x27   : > { %p2054_p3 = pneg %p2053_p0 }
  0x29   : > { %p2059_p7 = pnand %p2057_p5, %p2054_p3 }
  0x2b   : > { %2062 = shalt.err (!%p2059_p7)
}
  0x2c   : > { %s2063_s17 = scalar_lea.vmem %s2397_s13, 6144  ;;  %p2071_p2 = scmp.lt.s32.totalorder %s2397_s13, %s2397_s13 }
  0x2d   : > { %p2064_p9 = scmp.ne.s32.totalorder %s2397_s13, %s2063_s17  ;;  %p2072_p6 = scmp.lt.s32.totalorder %s2063_s17, %s2063_s17 }
  0x2f   : > { %p2066_p10 = pnand %p2064_p9, %p2420_p13  ;;  %p2073_p12 = por %p2072_p6, %p2071_p2 }
  0x31   : > { %p2067_p1 = pneg %p2066_p10 }
  0x33   : > { %p2074_p0 = pnand %p2073_p12, %p2067_p1 }
  0x35   : > { %2077 = shalt.err (!%p2074_p0)
}
  0x36   : > { %s2767_s19 = smov 128   ;;  %s2768_s20 = smov 8  }
  0x37   : > { %1965 = dma.hbm_to_vmem [thread:$0]  (!%p2404_p11), %s2781_s2, 6144, %s2397_s13, [#allocation8], %s2767_s19, %s2767_s19, %s2768_s20  }
  0x38   : > { %s2783_s4 = sld [smem:[#allocation23_spill]] }
  0x3e   : > { %s2078_s15 = scalar_lea.hbm %s2783_s4, 6144 }
  0x3f   : > { %p2079_p1 = scmp.ne.s32.totalorder %s2783_s4, %s2078_s15  ;;  %p2085_p10 = scmp.lt.u32.totalorder %s2078_s15, %s2783_s4 }
  0x41   : > { %p2081_p2 = pnand %p2079_p1, %p2420_p13 }
  0x43   : > { %p2082_p6 = pneg %p2081_p2 }
  0x45   : > { %p2087_p3 = pnand %p2085_p10, %p2082_p6 }
  0x47   : > { %2090 = shalt.err (!%p2087_p3)
}
  0x48   : > { %s2091_s13 = scalar_lea.vmem %s2408_s16, 6144  ;;  %p2099_p12 = scmp.lt.s32.totalorder %s2408_s16, %s2408_s16 }
  0x49   : > { %p2092_p5 = scmp.ne.s32.totalorder %s2408_s16, %s2091_s13  ;;  %p2100_p0 = scmp.lt.s32.totalorder %s2091_s13, %s2091_s13 }
  0x4b   : > { %p2094_p7 = pnand %p2092_p5, %p2420_p13  ;;  %p2101_p1 = por %p2100_p0, %p2099_p12 }
  0x4d   : > { %p2095_p9 = pneg %p2094_p7 }
  0x4f   : > { %p2102_p2 = pnand %p2101_p1, %p2095_p9 }
  0x51   : > { %2105 = shalt.err (!%p2102_p2)
}
  0x52   : > { %1968 = dma.hbm_to_vmem [thread:$0]  (!%p2404_p11), %s2783_s4, 6144, %s2408_s16, [#allocation11], %s2767_s19, %s2767_s19, %s2768_s20  }
  0x53   : > { %s2784_s6 = sld [smem:[#allocation24_spill]] }
  0x59   : > { %s2106_s22 = scalar_lea.hbm %s2784_s6, 2048 }
  0x5a   : > { %p2107_p6 = scmp.ne.s32.totalorder %s2784_s6, %s2106_s22  ;;  %p2113_p5 = scmp.lt.u32.totalorder %s2106_s22, %s2784_s6 }
  0x5c   : > { %p2109_p10 = pnand %p2107_p6, %p2420_p13 }
  0x5e   : > { %p2110_p3 = pneg %p2109_p10 }
  0x60   : > { %p2115_p7 = pnand %p2113_p5, %p2110_p3 }
  0x62   : > { %2118 = shalt.err (!%p2115_p7)
}
  0x63   : > { %s2119_s13 = scalar_lea.vmem %s278_s18, 2048  ;;  %p2127_p1 = scmp.lt.s32.totalorder %s278_s18, %s278_s18 }
  0x64   : > { %p2120_p9 = scmp.ne.s32.totalorder %s278_s18, %s2119_s13  ;;  %p2128_p2 = scmp.lt.s32.totalorder %s2119_s13, %s2119_s13 }
  0x66   : > { %p2122_p12 = pnand %p2120_p9, %p2420_p13  ;;  %p2129_p4 = por %p2128_p2, %p2127_p1 }
  0x68   : > { %p2123_p0 = pneg %p2122_p12 }
  0x6a   : > { %p2130_p8 = pnand %p2129_p4, %p2123_p0 }
  0x6c   : > { %2133 = shalt.err (!%p2130_p8)
}
  0x6d   : > { %1971 = dma.hbm_to_vmem [thread:$0]  (!%p2404_p11), %s2784_s6, 2048, %s278_s18, [#allocation11], %s2767_s19, %s2767_s19, %s2768_s20  }
  0x6e   : > { %s48_s8 = sadd.s32 1, %s2276_s26  ;;  %s39_s14 = sadd.s32 1, %s2284_s28 }
  0x6f   : > { %p55_p4 = scmp.ne.s32.totalorder %s2276_s26, %s2272_s25  ;;  %p41_p8 = scmp.ge.s32.totalorder %s39_s14, 2 }
  0x70   : > { %p56_p13 = scmp.eq.s32.totalorder %s2288_s29, 0  ;;  %p2785_p6 = scmp.eq.s32.totalorder %s2374_s30, 1 }
  0x71   : > { %p1986_p3 = scmp.lt.s32.totalorder %s2288_s29, 2  ;;  %s2810_s14 = smov (%p41_p8, %s39_s14), 0 }
  0x72   : > { %p2499_p10 = por %p2785_p6, %p55_p4  ;;  %p57_p5 = por %p56_p13, %p55_p4 }
  0x73   : > { %s2507_s10 = sand.u32 1, %s2276_s26   ;;  %s43_s18 = ssub.s32 %s2284_s28, %s2810_s14 }
  0x74   : > { %s2786_s24 = scalar_select %p2499_p10, 1, 0 }
  0x75   : > { %p46_p11 = scmp.eq.s32.totalorder %s43_s18, 0  ;;  %s1323_s21 = sshll.u32 %s2507_s10, 4 }
  0x76   : > { %s1342_s22 = sshll.u32 %s2284_s28, 8  ;;  %s2787_s0 = sld [smem:[#allocation21_spill]] }
  0x77   : > { %s2514_s23 = scalar_select %p46_p11, %s2276_s26, %s48_s8  }
  0x78   : > { %s295_s13 = scalar_lea.vmem [#allocation4], %s1323_s21  ;;  %p2525_p7 = pnand %p1986_p3, %p57_p5 }
  0x79   : > { %s304_s16 = sshll.u32 %s295_s13, 4  ;;  %s1326_s18 = sshll.u32 %s2507_s10, 3  ;;  %s2521_s16 = int_to_ptr.vmem [resolvable:$true] %s304_s16 }
  0x7a   : > { %s292_s12 = scalar_lea.sflag [#allocation5], %s2507_s10  ;;  %p2136_p12 = pneg %p2525_p7 }
  0x7c   : > { %s2519_s17 = scalar_lea.hbm %s2787_s0, %s1342_s22  ;;  %s2139_s13 = scalar_lea.hbm %s2787_s0, 512 }
  0x7d   : > { %s2134_s22 = scalar_lea.hbm %s2519_s17, 256  ;;  %p2140_p2 = scmp.lt.u32.totalorder %s2519_s17, %s2787_s0 }
  0x7e   : > { %p2135_p9 = scmp.ne.s32.totalorder %s2519_s17, %s2134_s22  ;;  %p2141_p4 = scmp.lt.u32.totalorder %s2139_s13, %s2134_s22 }
  0x7f   : > { %p2143_p13 = scmp.lt.u32.totalorder %s2134_s22, %s2519_s17 }
  0x80   : > { %p2137_p0 = pnand %p2136_p12, %p2135_p9  ;;  %p2142_p8 = por %p2141_p4, %p2140_p2 }
  0x82   : > { %p2138_p1 = pneg %p2137_p0  ;;  %p2144_p6 = por %p2143_p13, %p2142_p8 }
  0x84   : > { %p2145_p3 = pnand %p2144_p6, %p2138_p1 }
  0x86   : > { %2148 = shalt.err (!%p2145_p3)
}
  0x87   : > { %s2149_s8 = scalar_lea.vmem %s2521_s16, 256  ;;  %s2295_s21 = smov [#allocation4]  }
  0x88   : > { %p2150_p5 = scmp.ne.s32.totalorder %s2521_s16, %s2149_s8  ;;  %s2154_s15 = sshll.u32 %s2295_s21, 4  ;;  %s2155_s15 = int_to_ptr.vmem [resolvable:$false] %s2154_s15 }
  0x89   : > { %s2156_s19 = scalar_lea.vmem %s2155_s15, 512  ;;  %p2157_p0 = scmp.lt.s32.totalorder %s2521_s16, %s2155_s15 }
  0x8a   : > { %p2152_p11 = pnand %p2150_p5, %p2136_p12  ;;  %p2158_p2 = scmp.lt.s32.totalorder %s2156_s19, %s2149_s8 }
  0x8c   : > { %p2153_p9 = pneg %p2152_p11  ;;  %p2159_p4 = por %p2158_p2, %p2157_p0 }
  0x8e   : > { %p2160_p8 = pnand %p2159_p4, %p2153_p9 }
  0x90   : > { %2163 = shalt.err (!%p2160_p8)
}
  0x91   : > { %s2789_s20 = smov 8   ;;  %s2790_s22 = smov 128  }
  0x92   : > { %1975 = dma.hbm_to_vmem [thread:$0]  (!%p2525_p7), %s2519_s17, 256, %s2521_s16, %s292_s12, %s2790_s22, %s2790_s22, %s2789_s20  }
  0x93   : > { %s1327_s13 = sshll.u32 %s2284_s28, 7  ;;  %s318_s19 = scalar_lea.vmem [#allocation7], %s1326_s18 }
  0x94   : > { %s2566_s15 = scalar_lea.hbm %s2754_s1, %s1327_s13  ;;  %s326_s0 = sshll.u32 %s318_s19, 4  ;;  %s327_s0 = int_to_ptr.vmem [resolvable:$true] %s326_s0 }
  0x95   : > { %s2791_s2 = sand.u32 1, %s2288_s29   ;;  %s2164_s6 = scalar_lea.hbm %s2566_s15, 128 }
  0x96   : > { %s315_s4 = scalar_lea.sflag [#allocation8], %s2791_s2  ;;  %p2165_p1 = scmp.ne.s32.totalorder %s2566_s15, %s2164_s6 }
  0x97   : > { %s2169_s12 = scalar_lea.hbm %s2754_s1, 256  ;;  %p2170_p3 = scmp.lt.u32.totalorder %s2566_s15, %s2754_s1 }
  0x98   : > { %p2167_p13 = pnand %p2165_p1, %p2136_p12  ;;  %p2171_p5 = scmp.lt.u32.totalorder %s2169_s12, %s2164_s6 }
  0x99   : > { %p2173_p9 = scmp.lt.u32.totalorder %s2164_s6, %s2566_s15 }
  0x9a   : > { %p2168_p6 = pneg %p2167_p13  ;;  %p2172_p11 = por %p2171_p5, %p2170_p3 }
  0x9c   : > { %p2174_p0 = por %p2173_p9, %p2172_p11 }
  0x9e   : > { %p2175_p2 = pnand %p2174_p0, %p2168_p6 }
  0xa0   : > { %2178 = shalt.err (!%p2175_p2)
}
  0xa1   : > { %s2179_s2 = scalar_lea.vmem %s327_s0, 128  ;;  %s2296_s18 = smov [#allocation7]  }
  0xa2   : > { %p2180_p4 = scmp.ne.s32.totalorder %s327_s0, %s2179_s2  ;;  %s2184_s22 = sshll.u32 %s2296_s18, 4  ;;  %s2185_s22 = int_to_ptr.vmem [resolvable:$false] %s2184_s22 }
  0xa3   : > { %s2186_s13 = scalar_lea.vmem %s2185_s22, 256  ;;  %p2187_p13 = scmp.lt.s32.totalorder %s327_s0, %s2185_s22 }
  0xa4   : > { %p2182_p8 = pnand %p2180_p4, %p2136_p12  ;;  %p2188_p10 = scmp.lt.s32.totalorder %s2186_s13, %s2179_s2 }
  0xa6   : > { %p2183_p1 = pneg %p2182_p8  ;;  %p2189_p3 = por %p2188_p10, %p2187_p13 }
  0xa8   : > { %p2190_p5 = pnand %p2189_p3, %p2183_p1 }
  0xaa   : > { %2193 = shalt.err (!%p2190_p5)
}
  0xab   : > { %1978 = dma.hbm_to_vmem [thread:$0]  (!%p2525_p7), %s2566_s15, 128, %s327_s0, %s315_s4  }
  0xac   : > { %p2792_p6 = scmp.ne.s32.totalorder %s2779_s11, 0 }
  0xad   : > { %s2594_s6 = sand.u32 (!%p2792_p6), 1, %s2272_s25   ;;  %p2793_p10 = scmp.ne.s32.totalorder (!%p2792_p6), %s2776_s9, 0 }
  0xae   : > { %335 = sbr.rel (%p2792_p6) target bundleno = 853 (0x355), region = 48  ;;  %s1329_s21 = sshll.u32 (!%p2792_p6), %s2594_s6, 4 }
  0xaf   : > { %s338_s8 = scalar_lea.sflag (!%p2792_p6), [#allocation5], %s2594_s6  ;;  %s2600_s19 = scalar_lea.vmem (!%p2792_p6), [#allocation4], %s1329_s21 }
  0xb5   : > { %2247 = dma.done.wait (%p2793_p10), %s338_s8, 256  }
  0xb6   : > { %2249 = vsyncadd (%p2793_p10), %s338_s8, 4294967040  ;;  %s346_s0 = sand.u32 1, %s2374_s30   ;;  %s1330_s4 = sshll.u32 %s2594_s6, 3 }
  0xb7   : > { %s347_s11 = scalar_lea.sflag [#allocation8], %s346_s0  ;;  %s2608_s7 = scalar_lea.vmem [#allocation7], %s1330_s4 }
  0xb8   : > { %2251 = dma.done.wait (%p2793_p10), %s347_s11, 128  }
  0xb9   : > { %2253 = vsyncadd (%p2793_p10), %s347_s11, 4294967168  ;;  %p2794_p7 = scmp.eq.s32.totalorder %s2374_s30, 0 }
  0xbb   : > { %2255 = dma.done.wait (%p2794_p7), [#allocation8], 6144   ;;  %p2795_p12 = pmov %p2794_p7 }
  0xbc   : > { %p2796_p11 = pmov %p2794_p7 }
  0xbd   : > { %2257 = vsyncadd (%p2795_p12), [#allocation8], 4294961152 }
  0xbe   : > { %2259 = dma.done.wait (%p2796_p11), [#allocation11], 8192   ;;  %p2797_p9 = pmov %p2794_p7 }
  0xbf   : > { %v2297_v0 = vmov 0.0|0.0   ;;  %vm2298_vm0 = vmmov 0   ;;  %v2299_v1 = vmov 0.0   ;;  %v443_v2 = vld [vmem:[#allocation9 + $0x80] sm:$0xff]  ;;  %v444_v3 = vld [vmem:[#allocation9 + $0x88] sm:$0xff]  ;;  %v445_v4 = vld [vmem:[#allocation9 + $0x90] sm:$0xff] }
  0xc0   : > { %2261 = vsyncadd (%p2797_p9), [#allocation11], 4294959104  ;;  %1736 = vmatprep.subr.bf16.mxu0 %v2297_v0  ;;  %1505 = vmatprep.mubr.msk.f32.mxu0 %vm2298_vm0, %v2299_v1  ;;  %v1737_v5 = vpack.c.bf16 %v444_v3, %v443_v2  ;;  %v446_v6 = vld [vmem:[#allocation9 + $0x98] sm:$0xff]  ;;  %v447_v8 = vld [vmem:[#allocation9 + $0xa0] sm:$0xff]  ;;  %s397_s16 = scalar_lea.vmem [#allocation13], %s1329_s21  ;;  %s1343_s10 = sshll.u32 %s2280_s27, 8 }
  0xc1   : > { %v1740_v7 = vpack.c.bf16 %v446_v6, %v445_v4  ;;  %v448_v9 = vld [vmem:[#allocation9 + $0xa8] sm:$0xff]  ;;  %v400_v10 = vld [vmem:[%s2608_s7] sm:$0x3]  ;;  %v415_v22 = vld [vmem:[%s2608_s7 + $0x2] sm:$0x3]  ;;  %s1177_s12 = sshll.u32 %s397_s16, 4  ;;  %s2699_s12 = int_to_ptr.vmem [resolvable:$true] %s1177_s12 }
  0xc2   : > { %1738 = vmatpush3.bf16.msra.mxu0 %v1737_v5  ;;  %v2628_v11 = vld [vmem:[%s2600_s19] sm:$0xff]  ;;  %vm401_vm1 = vcmp.ge.f32.partialorder %v400_v10, 0.0  ;;  %v402_v12 = vmul.f32 0.2, %v400_v10  ;;  %v1743_v13 = vpack.c.bf16 %v448_v9, %v447_v8  ;;  %v450_v16 = vld [vmem:[#allocation9 + $0xb8] sm:$0xff]  ;;  %v452_v24 = vld [vmem:[#allocation9 + $0xc8] sm:$0xff] }
  0xc3   : > { %1739 = vmatprep.subr.bf16.mxu0 %v2297_v0  ;;  %vm407_vm2 = vcmp.ge.f32.partialorder %v2628_v11, 0.0  ;;  %v409_v14 = vmul.f32 0.2, %v2628_v11  ;;  %v449_v15 = vld [vmem:[#allocation9 + $0xb0] sm:$0xff]  ;;  %v2638_v19 = vld [vmem:[%s2600_s19 + $0x8] sm:$0xff]  ;;  %v451_v23 = vld [vmem:[#allocation9 + $0xc0] sm:$0xff] }
  0xc4   : > { %v403_v17 = vsel %vm401_vm1, %v400_v10, %v402_v12  ;;  %v1746_v20 = vpack.c.bf16 %v450_v16, %v449_v15  ;;  %vm408_vm3 = vcmp.ge.f32.partialorder %v2638_v19, 0.0  ;;  %v410_v21 = vmul.f32 0.2, %v2638_v19  ;;  %v453_v29 = vld [vmem:[#allocation9 + $0xd0] sm:$0xff]  ;;  %v454_v30 = vld [vmem:[#allocation9 + $0xd8] sm:$0xff]  ;;  %v455_v32 = vld [vmem:[#allocation9 + $0xe0] sm:$0xff] }
  0xc5   : > { %404 = vst [vmem:[#allocation2] sm:$0x3] %v403_v17  ;;  %v2634_v18 = vsel %vm407_vm2, %v2628_v11, %v409_v14  ;;  %vm416_vm4 = vcmp.ge.f32.partialorder %v415_v22, 0.0  ;;  %v417_v25 = vmul.f32 0.2, %v415_v22  ;;  %v1749_v28 = vpack.c.bf16 %v452_v24, %v451_v23  ;;  %v456_v33 = vld [vmem:[#allocation9 + $0xe8] sm:$0xff] }
  0xc6   : > { %1741 = vmatpush3.bf16.msra.mxu0 %v1740_v7  ;;  %413 = vst [vmem:[#allocation2 + $0x2] sm:$0xff] %v2634_v18  ;;  %v2645_v26 = vsel %vm408_vm3, %v2638_v19, %v410_v21  ;;  %v1752_v31 = vpack.c.bf16 %v454_v30, %v453_v29  ;;  %v1755_v34 = vpack.c.bf16 %v456_v33, %v455_v32  ;;  %v457_v35 = vld [vmem:[#allocation9 + $0xf0] sm:$0xff]  ;;  %v458_v36 = vld [vmem:[#allocation9 + $0xf8] sm:$0xff]  ;;  %v423_v38 = vld [vmem:[#allocation9] sm:$0xff]  ;;  %s2798_s18 = sld [smem:[#allocation25_spill]]  ;;  %s1162_s13 = scalar_lea.sflag [#allocation6], %s2594_s6 }
  0xc7   : > { %1742 = vmatprep.subr.bf16.mxu0 %v2297_v0  ;;  %414 = vst [vmem:[#allocation2 + $0xa] sm:$0xff] %v2645_v26  ;;  %v418_v27 = vsel %vm416_vm4, %v415_v22, %v417_v25  ;;  %v1758_v37 = vpack.c.bf16 %v458_v36, %v457_v35  ;;  %v424_v39 = vld [vmem:[#allocation9 + $0x8] sm:$0xff]  ;;  %v425_v42 = vld [vmem:[#allocation9 + $0x10] sm:$0xff]  ;;  %v426_v43 = vld [vmem:[#allocation9 + $0x18] sm:$0xff]  ;;  %s2194_s21 = scalar_lea.vmem %s2699_s12, 256  ;;  %p2799_p2 = scmp.ne.s32.totalorder %s2786_s24, 0 }
  0xc8   : > { %419 = vst [vmem:[#allocation2 + $0x12] sm:$0x3] %v418_v27  ;;  %v1761_v41 = vpack.c.bf16 %v424_v39, %v423_v38  ;;  %v1764_v44 = vpack.c.bf16 %v426_v43, %v425_v42  ;;  %v427_v46 = vld [vmem:[#allocation9 + $0x20] sm:$0xff]  ;;  %v428_v47 = vld [vmem:[#allocation9 + $0x28] sm:$0xff]  ;;  %v429_v50 = vld [vmem:[#allocation9 + $0x30] sm:$0xff]  ;;  %p2195_p0 = scmp.ne.s32.totalorder %s2699_s12, %s2194_s21  ;;  %s2300_s27 = smov [#allocation13]  }
  0xc9   : > { %v1767_v48 = vpack.c.bf16 %v428_v47, %v427_v46  ;;  %v430_v51 = vld [vmem:[#allocation9 + $0x38] sm:$0xff]  ;;  %v431_v53 = vld [vmem:[#allocation9 + $0x40] sm:$0xff]  ;;  %v432_v54 = vld [vmem:[#allocation9 + $0x48] sm:$0xff]  ;;  %s2198_s8 = sshll.u32 %s2300_s27, 4  ;;  %s2199_s8 = int_to_ptr.vmem [resolvable:$false] %s2198_s8 }
  0xca   : > { %1744 = vmatpush3.bf16.msra.mxu0 %v1743_v13  ;;  %v1770_v52 = vpack.c.bf16 %v430_v51, %v429_v50  ;;  %v1773_v55 = vpack.c.bf16 %v432_v54, %v431_v53  ;;  %v433_v56 = vld [vmem:[#allocation9 + $0x50] sm:$0xff]  ;;  %v434_v57 = vld [vmem:[#allocation9 + $0x58] sm:$0xff]  ;;  %v435_v59 = vld [vmem:[#allocation9 + $0x60] sm:$0xff]  ;;  %p2196_p4 = pnand %p2195_p0, %p2799_p2  ;;  %s2200_s19 = scalar_lea.vmem %s2199_s8, 512 }
  0xcb   : > { %1745 = vmatprep.subr.bf16.mxu0 %v2297_v0  ;;  %v1776_v58 = vpack.c.bf16 %v434_v57, %v433_v56  ;;  %v436_v60 = vld [vmem:[#allocation9 + $0x68] sm:$0xff]  ;;  %v437_v62 = vld [vmem:[#allocation9 + $0x70] sm:$0xff]  ;;  %v438_v63 = vld [vmem:[#allocation9 + $0x78] sm:$0xff]  ;;  %p2201_p1 = scmp.lt.s32.totalorder %s2699_s12, %s2199_s8  ;;  %p2202_p13 = scmp.lt.s32.totalorder %s2200_s19, %s2194_s21 }
  0xcc   : > { %v1779_v61 = vpack.c.bf16 %v436_v60, %v435_v59  ;;  %v1782_v2 = vpack.c.bf16 %v438_v63, %v437_v62  ;;  %v623_v3 = vld [vmem:[#allocation9 + $0x100] sm:$0xff]  ;;  %v624_v4 = vld [vmem:[#allocation9 + $0x108] sm:$0xff]  ;;  %v625_v7 = vld [vmem:[#allocation9 + $0x110] sm:$0xff]  ;;  %s2704_s22 = scalar_lea.hbm %s2798_s18, %s1343_s10  ;;  %p2197_p8 = pneg %p2196_p4 }
  0xcd   : > { %v439_v40 = vld [vmem:[#allocation2 + $0x1] sm:$0xff]  ;;  %v1785_v6 = vpack.c.bf16 %v624_v4, %v623_v3  ;;  %v626_v8 = vld [vmem:[#allocation9 + $0x118] sm:$0xff]  ;;  %v629_v16 = vld [vmem:[#allocation9 + $0x130] sm:$0xff]  ;;  %p2203_p3 = por %p2202_p13, %p2201_p1 }
  0xce   : > { %1747 = vmatpush3.bf16.msra.mxu0 %v1746_v20  ;;  %v440_v45 = vld [vmem:[#allocation2 + $0x9] sm:$0xff]  ;;  %v420_v5 = vld [vmem:[#allocation2] sm:$0xff]  ;;  %v1788_v10 = vpack.c.bf16 %v626_v8, %v625_v7  ;;  %v630_v17 = vld [vmem:[#allocation9 + $0x138] sm:$0xff] }
  0xcf   : > { %1748 = vmatprep.subr.bf16.mxu0 %v2297_v0  ;;  %v441_v49 = vld [vmem:[#allocation2 + $0x11] sm:$0x3]  ;;  %v421_v9 = vld [vmem:[#allocation2 + $0x8] sm:$0xff]  ;;  %v627_v12 = vld [vmem:[#allocation9 + $0x120] sm:$0xff]  ;;  %v1794_v20 = vpack.c.bf16 %v630_v17, %v629_v16  ;;  %p2204_p5 = pnand %p2203_p3, %p2197_p8 }
  0xd0   : > { %v628_v13 = vld [vmem:[#allocation9 + $0x128] sm:$0xff]  ;;  %v422_v14 = vld [vmem:[#allocation2 + $0x10] sm:$0x3]  ;;  %v631_v21 = vld [vmem:[#allocation9 + $0x140] sm:$0xff] }
  0xd1   : > { %v1791_v15 = vpack.c.bf16 %v628_v13, %v627_v12  ;;  %v632_v22 = vld [vmem:[#allocation9 + $0x148] sm:$0xff]  ;;  %v633_v24 = vld [vmem:[#allocation9 + $0x150] sm:$0xff]  ;;  %v634_v25 = vld [vmem:[#allocation9 + $0x158] sm:$0xff]  ;;  %v743_v12 = vlaneseq }
  0xd2   : > { %1750 = vmatpush3.bf16.msra.mxu0 %v1749_v28  ;;  %v1797_v23 = vpack.c.bf16 %v632_v22, %v631_v21  ;;  %v1800_v27 = vpack.c.bf16 %v634_v25, %v633_v24  ;;  %v635_v28 = vld [vmem:[#allocation9 + $0x160] sm:$0xff]  ;;  %v636_v29 = vld [vmem:[#allocation9 + $0x168] sm:$0xff]  ;;  %v638_v32 = vld [vmem:[#allocation9 + $0x178] sm:$0xff] }
  0xd3   : > { %1751 = vmatprep.subr.bf16.mxu0 %v2297_v0  ;;  %v1803_v30 = vpack.c.bf16 %v636_v29, %v635_v28  ;;  %v793_v35 = vld [vmem:[#allocation10 + $0x80] sm:$0xff]  ;;  %v794_v36 = vld [vmem:[#allocation10 + $0x88] sm:$0xff]  ;;  %v796_v39 = vld [vmem:[#allocation10 + $0x98] sm:$0xff]  ;;  %v744_v13 = vshrl.u32 %v743_v12, 7 }
  0xd4   : > { %v1808_v38 = vpack.c.bf16 %v794_v36, %v793_v35  ;;  %v800_v42 = vld [vmem:[#allocation10 + $0xb8] sm:$0xff]  ;;  %v801_v43 = vld [vmem:[#allocation10 + $0xc0] sm:$0xff]  ;;  %v803_v46 = vld [vmem:[#allocation10 + $0xd0] sm:$0xff] }
  0xd5   : > { %v804_v47 = vld [vmem:[#allocation10 + $0xd8] sm:$0xff]  ;;  %v806_v50 = vld [vmem:[#allocation10 + $0xe8] sm:$0xff]  ;;  %v748_v16 = vadd.s32 4294967295, %v744_v13  ;;  %v970_v12 = vld [vmem:[#allocation10 + $0x140] sm:$0xff] }
  0xd6   : > { %1753 = vmatpush3.bf16.msra.mxu0 %v1752_v31  ;;  %v637_v31 = vld [vmem:[#allocation9 + $0x170] sm:$0xff]  ;;  %1809 = vmatprep.subr.bf16.mxu1 %v1808_v38  ;;  %v808_v53 = vld [vmem:[#allocation10 + $0xf8] sm:$0xff]  ;;  %v775_v56 = vld [vmem:[#allocation10 + $0x8] sm:$0xff] }
  0xd7   : > { %1754 = vmatprep.subr.bf16.mxu0 %v2297_v0  ;;  %v1806_v33 = vpack.c.bf16 %v638_v32, %v637_v31  ;;  %1811 = vmatpush3.bf16.msra.mxu1 %v1808_v38  ;;  %vm751_vm5 = vcmp.ge.s32.totalorder %v748_v16, 0  ;;  %v973_v16 = vld [vmem:[#allocation10 + $0x158] sm:$0xff] }
  0xda   : > { %1756 = vmatpush3.bf16.msra.mxu0 %v1755_v34  ;;  %v621_v34 = vld [vmem:[#allocation2 + $0x12] sm:$0x3] }
  0xdb   : > { %1757 = vmatprep.subr.bf16.mxu0 %v2297_v0 }
  0xde   : > { %1759 = vmatpush3.bf16.msra.mxu0 %v1758_v37  ;;  %v795_v37 = vld [vmem:[#allocation10 + $0x90] sm:$0xff] }
  0xdf   : > { %1760 = vmatprep.subr.bf16.mxu0 %v2297_v0 }
  0xe1   : > { %1506 = vmatmul.mubr.f32.vlgmr.msra.gmra.mrb[0].mxu0 %v439_v40  ;;  %v1812_v40 = vpack.c.bf16 %v796_v39, %v795_v37 }
  0xe2   : > { %1762 = vmatpush3.bf16.msra.mxu0 %v1761_v41  ;;  %1508 = vmatprep.mubr.msk.f32.mxu0 %vm2298_vm0, %v2299_v1 }
  0xe3   : > { %1763 = vmatprep.subr.bf16.mxu0 %v2297_v0  ;;  %1813 = vmatprep.subr.bf16.mxu1 %v1812_v40 }
  0xe4   : > { %1815 = vmatpush3.bf16.msra.mxu1 %v1812_v40 }
  0xe5   : > { %1509 = vmatmul.mubr.f32.gmra.mrb[2].mxu0 %v440_v45 }
  0xe6   : > { %1765 = vmatpush3.bf16.msra.mxu0 %v1764_v44  ;;  %1511 = vmatprep.mubr.msk.f32.mxu0 %vm2298_vm0, %v2299_v1  ;;  %v802_v44 = vld [vmem:[#allocation10 + $0xc8] sm:$0xff] }
  0xe7   : > { %1766 = vmatprep.subr.bf16.mxu0 %v2297_v0  ;;  %v1824_v45 = vpack.c.bf16 %v802_v44, %v801_v43  ;;  %v779_v43 = vld [vmem:[#allocation10 + $0x28] sm:$0xff] }
  0xe9   : > { %1512 = vmatmul.mubr.f32.gmra.mrb[4].mxu0 %v441_v49  ;;  %v805_v49 = vld [vmem:[#allocation10 + $0xe0] sm:$0xff] }
  0xea   : > { %1768 = vmatpush3.bf16.msra.mxu0 %v1767_v48  ;;  %1546 = vmatprep.mubr.msk.f32.mxu0 %vm2298_vm0, %v2299_v1  ;;  %v1828_v48 = vpack.c.bf16 %v804_v47, %v803_v46  ;;  %v1832_v51 = vpack.c.bf16 %v806_v50, %v805_v49  ;;  %v781_v46 = vld [vmem:[#allocation10 + $0x38] sm:$0xff]  ;;  %v783_v49 = vld [vmem:[#allocation10 + $0x48] sm:$0xff] }
  0xeb   : > { %1769 = vmatprep.subr.bf16.mxu0 %v2297_v0 }
  0xee   : > { %1771 = vmatpush3.bf16.msra.mxu0 %v1770_v52  ;;  %v807_v52 = vld [vmem:[#allocation10 + $0xf0] sm:$0xff] }
  0xef   : > { %1772 = vmatprep.subr.bf16.mxu0 %v2297_v0  ;;  %v1836_v54 = vpack.c.bf16 %v808_v53, %v807_v52  ;;  %v785_v52 = vld [vmem:[#allocation10 + $0x58] sm:$0xff] }
  0xf2   : > { %1774 = vmatpush3.bf16.msra.mxu0 %v1773_v55  ;;  %v774_v55 = vld [vmem:[#allocation10] sm:$0xff] }
  0xf3   : > { %1775 = vmatprep.subr.bf16.mxu0 %v2297_v0  ;;  %v1840_v57 = vpack.c.bf16 %v775_v56, %v774_v55  ;;  %v787_v55 = vld [vmem:[#allocation10 + $0x68] sm:$0xff] }
  0xf6   : > { %1777 = vmatpush3.bf16.msra.mxu0 %v1776_v58 }
  0xf7   : > { %1778 = vmatprep.subr.bf16.mxu0 %v2297_v0 }
  0xfa   : > { %1780 = vmatpush3.bf16.msra.mxu0 %v1779_v61 }
  0xfb   : > { %1781 = vmatprep.subr.bf16.mxu0 %v2297_v0 }
  0xfe   : > { %1783 = vmatpush3.bf16.msra.mxu0 %v1782_v2 }
  0xff   : > { %1784 = vmatprep.subr.bf16.mxu0 %v2297_v0 }
 0x101   : > { %1547 = vmatmul.mubr.f32.vlgmr.msra.gmra.mrb[6].mxu0 %v420_v5 }
 0x102   : > { %1786 = vmatpush3.bf16.msra.mxu0 %v1785_v6  ;;  %1549 = vmatprep.mubr.msk.f32.mxu0 %vm2298_vm0, %v2299_v1 }
 0x103   : > { %1787 = vmatprep.subr.bf16.mxu0 %v2297_v0 }
 0x105   : > { %1550 = vmatmul.mubr.f32.gmra.mrb[8].mxu0 %v421_v9 }
 0x106   : > { %1789 = vmatpush3.bf16.msra.mxu0 %v1788_v10  ;;  %1552 = vmatprep.mubr.msk.f32.mxu0 %vm2298_vm0, %v2299_v1 }
 0x107   : > { %1790 = vmatprep.subr.bf16.mxu0 %v2297_v0 }
 0x109   : > { %1553 = vmatmul.mubr.f32.gmra.mrb[10].mxu0 %v422_v14 }
 0x10a   : > { %1792 = vmatpush3.bf16.msra.mxu0 %v1791_v15  ;;  %1587 = vmatprep.mubr.msk.f32.mxu0 %vm2298_vm0, %v2299_v1  ;;  %v1335_v15 = vld [vmem:[%s2756_s3] ss:$0 sm:$0xff] }
 0x10b   : > { %1793 = vmatprep.subr.bf16.mxu0 %v2297_v0 }
 0x10e   : > { %1795 = vmatpush3.bf16.msra.mxu0 %v1794_v20 }
 0x10f   : > { %1796 = vmatprep.subr.bf16.mxu0 %v2297_v0 }
 0x112   : > { %1798 = vmatpush3.bf16.msra.mxu0 %v1797_v23 }
 0x113   : > { %1799 = vmatprep.subr.bf16.mxu0 %v2297_v0 }
 0x116   : > { %1801 = vmatpush3.bf16.msra.mxu0 %v1800_v27  ;;  %v746_v27 = vadd.s32 16, %v744_v13  ;;  %v971_v13 = vld [vmem:[#allocation10 + $0x148] sm:$0xff] }
 0x117   : > { %1802 = vmatprep.subr.bf16.mxu0 %v2297_v0 }
 0x11a   : > { %1804 = vmatpush3.bf16.msra.mxu0 %v1803_v30 }
 0x11b   : > { %1805 = vmatprep.subr.bf16.mxu0 %v2297_v0  ;;  %v797_v0 = vld [vmem:[#allocation10 + $0xa0] sm:$0xff] }
 0x11e   : > { %1807 = vmatpush3.bf16.msra.mxu0 %v1806_v33 }
 0x121   : > { %1588 = vmatmul.mubr.f32.vlgmr.msra.gmra.mrb[12].mxu0 %v2634_v18  ;;  %v798_v18 = vld [vmem:[#allocation10 + $0xa8] sm:$0xff] }
 0x122   : > { %1590 = vmatprep.mubr.msk.f32.mxu0 %vm2298_vm0, %v2299_v1  ;;  %v1816_v41 = vpack.c.bf16 %v798_v18, %v797_v0  ;;  %v776_v18 = vld [vmem:[#allocation10 + $0x10] sm:$0xff] }
 0x124   : > { %1817 = vmatprep.subr.bf16.mxu1 %v1816_v41 }
 0x125   : > { %1591 = vmatmul.mubr.f32.gmra.mrb[14].mxu0 %v2645_v26  ;;  %1819 = vmatpush3.bf16.msra.mxu1 %v1816_v41  ;;  %v799_v26 = vld [vmem:[#allocation10 + $0xb0] sm:$0xff]  ;;  %v777_v41 = vld [vmem:[#allocation10 + $0x18] sm:$0xff] }
 0x126   : > { %1593 = vmatprep.mubr.msk.f32.mxu0 %vm2298_vm0, %v2299_v1  ;;  %v1820_v1 = vpack.c.bf16 %v800_v42, %v799_v26  ;;  %v1844_v26 = vpack.c.bf16 %v777_v41, %v776_v18  ;;  %v1076_v41 = vld [vmem:[#allocation12 + $0x50] sm:$0xff] }
 0x128   : > { %1821 = vmatprep.subr.bf16.mxu1 %v1820_v1 }
 0x129   : > { %1594 = vmatmul.mubr.f32.gmra.mrb[16].mxu0 %v621_v34  ;;  %1823 = vmatpush3.bf16.msra.mxu1 %v1820_v1  ;;  %v750_v34 = vadd.s32 4294967295, %v746_v27  ;;  %v778_v1 = vld [vmem:[#allocation10 + $0x20] sm:$0xff] }
 0x12a   : > { %1825 = vmatprep.subr.bf16.mxu1 %v1824_v45  ;;  %v1848_v44 = vpack.c.bf16 %v779_v43, %v778_v1  ;;  %v1066_v27 = vld [vmem:[#allocation12] sm:$0xff] }
 0x12b   : > { %vm756_vm9 = vcmp.lt.s32.totalorder %v750_v34, 16  ;;  %v1070_v34 = vld [vmem:[#allocation12 + $0x20] sm:$0xff] }
 0x12c   : > { %v1078_v1 = vld [vmem:[#allocation12 + $0x60] sm:$0xff] }
 0x12d   : > { %1827 = vmatpush3.bf16.msra.mxu1 %v1824_v45  ;;  %v780_v45 = vld [vmem:[#allocation10 + $0x30] sm:$0xff] }
 0x12e   : > { %1829 = vmatprep.subr.bf16.mxu1 %v1828_v48  ;;  %v1852_v47 = vpack.c.bf16 %v781_v46, %v780_v45  ;;  %v1081_v45 = vld [vmem:[#allocation12 + $0x78] sm:$0xff] }
 0x131   : > { %1831 = vmatpush3.bf16.msra.mxu1 %v1828_v48  ;;  %v782_v48 = vld [vmem:[#allocation10 + $0x40] sm:$0xff] }
 0x132   : > { %1833 = vmatprep.subr.bf16.mxu1 %v1832_v51  ;;  %v1856_v50 = vpack.c.bf16 %v783_v49, %v782_v48 }
 0x135   : > { %1835 = vmatpush3.bf16.msra.mxu1 %v1832_v51  ;;  %v784_v51 = vld [vmem:[#allocation10 + $0x50] sm:$0xff] }
 0x136   : > { %1837 = vmatprep.subr.bf16.mxu1 %v1836_v54  ;;  %v1860_v53 = vpack.c.bf16 %v785_v52, %v784_v51 }
 0x139   : > { %1839 = vmatpush3.bf16.msra.mxu1 %v1836_v54  ;;  %v786_v54 = vld [vmem:[#allocation10 + $0x60] sm:$0xff] }
 0x13a   : > { %1841 = vmatprep.subr.bf16.mxu1 %v1840_v57  ;;  %v1864_v56 = vpack.c.bf16 %v787_v55, %v786_v54 }
 0x1b4   : > { %v525_v58 = vpop.f32.mrb[0].mxu0 }
 0x1b5   : > { %v1507_v59 = vpop.f32.mrb[1].mxu0 }
 0x1b8   : > { %v530_v60 = vpop.f32.mrb[2].mxu0 }
 0x1b9   : > { %v1510_v61 = vpop.f32.mrb[3].mxu0 }
 0x1ba   : > { %v963_v61 = vld [vmem:[#allocation10 + $0x108] sm:$0xff] }
 0x1bc   : > { %v535_v62 = vpop.f32.mrb[4].mxu0 }
 0x1bd   : > { %v1513_v63 = vpop.f32.mrb[5].mxu0 }
 0x1be   : > { %v964_v63 = vld [vmem:[#allocation10 + $0x110] sm:$0xff] }
 0x1d4   : > { %v605_v2 = vpop.f32.mrb[6].mxu0 }
 0x1d5   : > { %v606_v3 = vadd.f32 %v605_v2, %v525_v58  ;;  %v1548_v4 = vpop.f32.mrb[7].mxu0  ;;  %v789_v58 = vld [vmem:[#allocation10 + $0x78] sm:$0xff] }
 0x1d6   : > { %v965_v2 = vld [vmem:[#allocation10 + $0x118] sm:$0xff]  ;;  %v966_v4 = vld [vmem:[#allocation10 + $0x120] sm:$0xff] }
 0x1d8   : > { %v610_v5 = vpop.f32.mrb[8].mxu0 }
 0x1d9   : > { %v611_v6 = vadd.f32 %v610_v5, %v530_v60  ;;  %v1551_v7 = vpop.f32.mrb[9].mxu0  ;;  %v962_v60 = vld [vmem:[#allocation10 + $0x100] sm:$0xff]  ;;  %v967_v5 = vld [vmem:[#allocation10 + $0x128] sm:$0xff] }
 0x1da   : > { %v1880_v7 = vpack.c.bf16 %v967_v5, %v966_v4 }
 0x1dc   : > { %v615_v8 = vpop.f32.mrb[10].mxu0 }
 0x1dd   : > { %v616_v9 = vadd.f32 %v615_v8, %v535_v62  ;;  %v1554_v10 = vpop.f32.mrb[11].mxu0  ;;  %v1872_v62 = vpack.c.bf16 %v963_v61, %v962_v60  ;;  %v968_v8 = vld [vmem:[#allocation10 + $0x130] sm:$0xff] }
 0x1f4   : > { %v705_v14 = vpop.f32.mrb[12].mxu0 }
 0x1f5   : > { %v719_v17 = vadd.f32 %v705_v14, %v606_v3  ;;  %v1589_v20 = vpop.f32.mrb[13].mxu0  ;;  %v1876_v3 = vpack.c.bf16 %v965_v2, %v964_v63  ;;  %v1888_v14 = vpack.c.bf16 %v971_v13, %v970_v12 }
 0x1f6   : > { %v974_v20 = vld [vmem:[#allocation10 + $0x160] sm:$0xff] }
 0x1f7   : > { %v729_v21 = vadd.f32 %v1335_v15, %v719_v17 }
 0x1f8   : > { %v710_v22 = vpop.f32.mrb[14].mxu0 }
 0x1f9   : > { %vm732_vm6 = vcmp.ge.f32.partialorder %v729_v21, 0.0  ;;  %v735_v23 = vmul.f32 0.2, %v729_v21  ;;  %v720_v24 = vadd.f32 %v710_v22, %v611_v6  ;;  %v1592_v25 = vpop.f32.mrb[15].mxu0 }
 0x1fb   : > { %v738_v28 = vsel %vm732_vm6, %v729_v21, %v735_v23  ;;  %v730_v29 = vadd.f32 %v1335_v15, %v720_v24  ;;  %v975_v21 = vld [vmem:[#allocation10 + $0x168] sm:$0xff]  ;;  %v976_v23 = vld [vmem:[#allocation10 + $0x170] sm:$0xff]  ;;  %v977_v24 = vld [vmem:[#allocation10 + $0x178] sm:$0xff] }
 0x1fc   : > { %v766_v30 = vsel %vm751_vm5, %v738_v28, 0.0  ;;  %v715_v31 = vpop.f32.mrb[16].mxu0  ;;  %v1896_v22 = vpack.c.bf16 %v975_v21, %v974_v20  ;;  %v1900_v25 = vpack.c.bf16 %v977_v24, %v976_v23 }
 0x1fd   : > { %769 = vst [vmem:[#allocation3] sm:$0xff] %v766_v30  ;;  %vm733_vm7 = vcmp.ge.f32.partialorder %v730_v29, 0.0  ;;  %v736_v32 = vmul.f32 0.2, %v730_v29  ;;  %v721_v33 = vadd.f32 %v715_v31, %v616_v9  ;;  %v1595_v35 = vpop.f32.mrb[17].mxu0  ;;  %v969_v9 = vld [vmem:[#allocation10 + $0x138] sm:$0xff] }
 0x1fe   : > { %v1884_v10 = vpack.c.bf16 %v969_v9, %v968_v8  ;;  %v1068_v30 = vld [vmem:[#allocation12 + $0x10] sm:$0xff]  ;;  %v1069_v31 = vld [vmem:[#allocation12 + $0x18] sm:$0xff]  ;;  %v1071_v35 = vld [vmem:[#allocation12 + $0x28] sm:$0xff] }
 0x1ff   : > { %v739_v36 = vsel %vm733_vm7, %v730_v29, %v736_v32  ;;  %v731_v37 = vadd.f32 %v1335_v15, %v721_v33  ;;  %v972_v15 = vld [vmem:[#allocation10 + $0x150] sm:$0xff]  ;;  %v1908_v32 = vpack.c.bf16 %v1069_v31, %v1068_v30 }
 0x200   : > { %770 = vst [vmem:[#allocation3 + $0x8] sm:$0xff] %v739_v36  ;;  %v1892_v17 = vpack.c.bf16 %v973_v16, %v972_v15 }
 0x201   : > { %vm734_vm8 = vcmp.ge.f32.partialorder %v731_v37, 0.0  ;;  %v737_v38 = vmul.f32 0.2, %v731_v37 }
 0x203   : > { %v740_v39 = vsel %vm734_vm8, %v731_v37, %v737_v38  ;;  %v1072_v37 = vld [vmem:[#allocation12 + $0x30] sm:$0xff]  ;;  %v1073_v38 = vld [vmem:[#allocation12 + $0x38] sm:$0xff] }
 0x204   : > { %v768_v40 = vsel %vm756_vm9, %v740_v39, 0.0  ;;  %v1916_v39 = vpack.c.bf16 %v1073_v38, %v1072_v37 }
 0x205   : > { %771 = vst [vmem:[#allocation3 + $0x10] sm:$0x3] %v768_v40  ;;  %v1074_v40 = vld [vmem:[#allocation12 + $0x40] sm:$0xff] }
 0x207   : > { %v790_v0 = vld [vmem:[#allocation3 + $0x1] sm:$0xff] }
 0x208   : > { %1628 = vmatprep.mubr.f32.mxu1 %v790_v0  ;;  %v959_v6 = vld [vmem:[#allocation3 + $0x2] sm:$0xff]  ;;  %v1075_v0 = vld [vmem:[#allocation12 + $0x48] sm:$0xff] }
 0x209   : > { %v1920_v18 = vpack.c.bf16 %v1075_v0, %v1074_v40 }
 0x20c   : > { %v791_v42 = vld [vmem:[#allocation3 + $0x9] sm:$0xff] }
 0x20d   : > { %1629 = vmatmul.mubr.f32.vlgmr.msra.gmra.mrb[0].mxu1 %v791_v42  ;;  %v960_v33 = vld [vmem:[#allocation3 + $0xa] sm:$0xff] }
 0x20e   : > { %1843 = vmatpush3.bf16.msra.mxu1 %v1840_v57  ;;  %2049 = vmatprep.mubr.msk.f32.mxu1 %vm751_vm5, %v738_v28  ;;  %v788_v57 = vld [vmem:[#allocation10 + $0x70] sm:$0xff]  ;;  %v1067_v28 = vld [vmem:[#allocation12 + $0x8] sm:$0xff] }
 0x20f   : > { %1845 = vmatprep.subr.bf16.mxu1 %v1844_v26  ;;  %v1868_v59 = vpack.c.bf16 %v789_v58, %v788_v57  ;;  %v1904_v29 = vpack.c.bf16 %v1067_v28, %v1066_v27 }
 0x212   : > { %1847 = vmatpush3.bf16.msra.mxu1 %v1844_v26  ;;  %v1077_v26 = vld [vmem:[#allocation12 + $0x58] sm:$0xff] }
 0x213   : > { %1849 = vmatprep.subr.bf16.mxu1 %v1848_v44  ;;  %v1924_v42 = vpack.c.bf16 %v1077_v26, %v1076_v41 }
 0x216   : > { %1851 = vmatpush3.bf16.msra.mxu1 %v1848_v44  ;;  %v1080_v44 = vld [vmem:[#allocation12 + $0x70] sm:$0xff] }
 0x217   : > { %1853 = vmatprep.subr.bf16.mxu1 %v1852_v47  ;;  %v1932_v46 = vpack.c.bf16 %v1081_v45, %v1080_v44 }
 0x21a   : > { %1855 = vmatpush3.bf16.msra.mxu1 %v1852_v47  ;;  %v1336_v47 = vld [vmem:[%s2758_s5] ss:$0 sm:$0xff] }
 0x21b   : > { %1857 = vmatprep.subr.bf16.mxu1 %v1856_v50 }
 0x21e   : > { %1859 = vmatpush3.bf16.msra.mxu1 %v1856_v50 }
 0x21f   : > { %1861 = vmatprep.subr.bf16.mxu1 %v1860_v53 }
 0x222   : > { %1863 = vmatpush3.bf16.msra.mxu1 %v1860_v53 }
 0x223   : > { %1865 = vmatprep.subr.bf16.mxu1 %v1864_v56 }
 0x226   : > { %1867 = vmatpush3.bf16.msra.mxu1 %v1864_v56 }
 0x227   : > { %1869 = vmatprep.subr.bf16.mxu1 %v1868_v59 }
 0x22a   : > { %1871 = vmatpush3.bf16.msra.mxu1 %v1868_v59 }
 0x22b   : > { %1873 = vmatprep.subr.bf16.mxu1 %v1872_v62 }
 0x22d   : > { %1664 = vmatmul.mubr.f32.vlgmr.msra.gmra.mrb[0].mxu1 %v739_v36  ;;  %v1912_v36 = vpack.c.bf16 %v1071_v35, %v1070_v34 }
 0x22e   : > { %1875 = vmatpush3.bf16.msra.mxu1 %v1872_v62  ;;  %1698 = vmatprep.mubr.f32.mxu1 %v959_v6 }
 0x22f   : > { %1877 = vmatprep.subr.bf16.mxu1 %v1876_v3 }
 0x232   : > { %1879 = vmatpush3.bf16.msra.mxu1 %v1876_v3 }
 0x233   : > { %1881 = vmatprep.subr.bf16.mxu1 %v1880_v7 }
 0x236   : > { %1883 = vmatpush3.bf16.msra.mxu1 %v1880_v7 }
 0x237   : > { %1885 = vmatprep.subr.bf16.mxu1 %v1884_v10 }
 0x23a   : > { %1887 = vmatpush3.bf16.msra.mxu1 %v1884_v10 }
 0x23b   : > { %1889 = vmatprep.subr.bf16.mxu1 %v1888_v14 }
 0x23e   : > { %1891 = vmatpush3.bf16.msra.mxu1 %v1888_v14 }
 0x23f   : > { %1893 = vmatprep.subr.bf16.mxu1 %v1892_v17 }
 0x242   : > { %1895 = vmatpush3.bf16.msra.mxu1 %v1892_v17 }
 0x243   : > { %1897 = vmatprep.subr.bf16.mxu1 %v1896_v22 }
 0x246   : > { %1899 = vmatpush3.bf16.msra.mxu1 %v1896_v22 }
 0x247   : > { %1901 = vmatprep.subr.bf16.mxu1 %v1900_v25 }
 0x24a   : > { %1903 = vmatpush3.bf16.msra.mxu1 %v1900_v25 }
 0x24b   : > { %1905 = vmatprep.subr.bf16.mxu1 %v1904_v29 }
 0x24d   : > { %1699 = vmatmul.mubr.f32.vlgmr.msra.gmra.mrb[0].mxu1 %v960_v33 }
 0x24e   : > { %1907 = vmatpush3.bf16.msra.mxu1 %v1904_v29  ;;  %1733 = vmatprep.mubr.f32.mxu1 %v2628_v11  ;;  %v1079_v11 = vld [vmem:[#allocation12 + $0x68] sm:$0xff] }
 0x24f   : > { %1909 = vmatprep.subr.bf16.mxu1 %v1908_v32  ;;  %v1928_v43 = vpack.c.bf16 %v1079_v11, %v1078_v1 }
 0x252   : > { %1911 = vmatpush3.bf16.msra.mxu1 %v1908_v32 }
 0x253   : > { %1913 = vmatprep.subr.bf16.mxu1 %v1912_v36 }
 0x256   : > { %1915 = vmatpush3.bf16.msra.mxu1 %v1912_v36 }
 0x257   : > { %1917 = vmatprep.subr.bf16.mxu1 %v1916_v39 }
 0x25a   : > { %1919 = vmatpush3.bf16.msra.mxu1 %v1916_v39 }
 0x25b   : > { %1921 = vmatprep.subr.bf16.mxu1 %v1920_v18 }
 0x25e   : > { %1923 = vmatpush3.bf16.msra.mxu1 %v1920_v18 }
 0x25f   : > { %1925 = vmatprep.subr.bf16.mxu1 %v1924_v42 }
 0x262   : > { %1927 = vmatpush3.bf16.msra.mxu1 %v1924_v42 }
 0x263   : > { %1929 = vmatprep.subr.bf16.mxu1 %v1928_v43 }
 0x266   : > { %1931 = vmatpush3.bf16.msra.mxu1 %v1928_v43 }
 0x267   : > { %1933 = vmatprep.subr.bf16.mxu1 %v1932_v46 }
 0x26a   : > { %1935 = vmatpush3.bf16.msra.mxu1 %v1932_v46 }
 0x26d   : > { %1734 = vmatmul.mubr.f32.vlgmr.msra.gmra.mrb[0].mxu1 %v2638_v19 }
 0x340   : > { %v1735_v48 = vpop.f32.mrb[0].mxu1 }
 0x341   : > { %v1936_v49 = vadd.f32 %v1735_v48, %v1336_v47  ;;  %v1148_v50 = vpop.f32.mrb[1].mxu1 }
 0x342   : > { %v1937_v51 = vadd.f32 %v1336_v47, %v1148_v50 }
 0x343   : > { %v1158_v52 = vmul.f32 0.70710677, %v1936_v49 }
 0x344   : > { %v1157_v19 = vmul.f32 0.70710677, %v1937_v51 }
 0x345   : > { %1160 = vst [vmem:[%s397_s16 + $0x8] sm:$0xff] %v1158_v52 }
 0x346   : > { %1159 = vst [vmem:[%s397_s16] sm:$0xff] %v1157_v19 }
 0x347   : > { %2207 = shalt.err (!%p2204_p5)
}
 0x348   : > { %s2208_s0 = scalar_lea.hbm %s2704_s22, 256  ;;  %s2212_s7 = scalar_lea.hbm %s2798_s18, 512 }
 0x349   : > { %p2209_p6 = scmp.ne.s32.totalorder %s2704_s22, %s2208_s0  ;;  %p2213_p12 = scmp.lt.u32.totalorder %s2704_s22, %s2798_s18 }
 0x34a   : > { %p2214_p11 = scmp.lt.u32.totalorder %s2212_s7, %s2208_s0  ;;  %p2216_p0 = scmp.lt.u32.totalorder %s2208_s0, %s2704_s22 }
 0x34b   : > { %p2210_p10 = pnand %p2209_p6, %p2799_p2 }
 0x34c   : > { %p2215_p9 = por %p2214_p11, %p2213_p12 }
 0x34d   : > { %p2211_p7 = pneg %p2210_p10 }
 0x34e   : > { %p2217_p4 = por %p2216_p0, %p2215_p9 }
 0x350   : > { %p2218_p8 = pnand %p2217_p4, %p2211_p7 }
 0x352   : > { %2221 = shalt.err (!%p2218_p8)
}
 0x353   : > { %s2301_s15 = smov 128   ;;  %s2302_s17 = smov 8  }
 0x354   : > { %1960 = dma.vmem_to_hbm [thread:$0]  (%p2799_p2), %s2699_s12, 256, %s2704_s22, %s1162_s13, %s2301_s15, %s2301_s15, %s2302_s17  }
 0x355 PF: > { %s2800_s16 = sld [smem:[#allocation19_spill]]  ;;  %s2801_s10 = sld [smem:[#allocation20_spill]] }
 0x356   : > { %p2803_p13 = scmp.ge.s32.totalorder %s2288_s29, 2 }
 0x35b   : > { %s1192_s20 = sand.u32 1, %s2800_s16   ;;  %p2802_p1 = scmp.ne.s32.totalorder %s2801_s10, 0 }
 0x35c   : > { %s1193_s2 = scalar_lea.sflag [#allocation6], %s1192_s20 }
 0x35d   : > { %p1980_p3 = pnand %p2803_p13, %p2802_p1 }
 0x35f   : > { %2263 = dma.done.wait (!%p1980_p3), %s1193_s2, 256  }
 0x360   : > { %2265 = vsyncadd (!%p1980_p3), %s1193_s2, 4294967040  ;;  %s27_s29 = sadd.s32 1, %s2288_s29   ;;  %s2804_s24 = smov %s2272_s25 }
 0x361   : > { %p24_p5 = scmp.ge.s32.totalorder %s27_s29, 4   ;;  %s2805_s25 = smov %s2276_s26 }
 0x362   : > { %s2806_s26 = smov %s2514_s23  ;;  %s2807_s27 = smov %s2284_s28 }
 0x363   : > { %s2808_s28 = smov %s2810_s14  ;;  %26 = sbr.rel (!%p24_p5) target bundleno = 15 (0xf), region = 122 }
 0x36a   :  { %1198 = vsyncpa [#allocation5], 1 }
 0x36b   :  { %1200 = vsyncpa [#allocation5 + $0x1], 1 }
 0x36c   :  { %1201 = vsyncpa [#allocation8], 1 }
 0x36d   :  { %1203 = vsyncpa [#allocation8 + $0x1], 1 }
 0x36e   :  { %1204 = vsyncpa [#allocation11], 1 }
 0x36f   :  { %1205 = vsyncpa [#allocation6], 1 }
 0x370   :  { %1207 = vsyncpa [#allocation6 + $0x1], 1 }

</bundles_post_ra>
